<compile_context>
chip_gen: v7x
topology: tpu7x:2x2x1
jax: 0.10.0
libtpu: 0.0.40
codegen_flags: <defaults>
</compile_context>

<pallas_src>
import functools

import jax
import jax.numpy as jnp
from jax.experimental import pallas as pl
from jax.experimental.pallas import tpu as pltpu


def _round_up(x, m):
    return ((x + m - 1) // m) * m


# ---------------------------------------------------------------------------
# Fused kernel: conv3x3+ReLU+GAP (backbone stand-in)  +  fc head  +  emb head
# ---------------------------------------------------------------------------
def _fused_kernel(lhs_ref, wc_ref, bc_ref,
                  w1_ref, b1_ref, w2_ref, b2_ref,
                  we1_ref, be1_ref, we2_ref, be2_ref,
                  logits_ref, fts_ref, emb_ref, *, N, H, W):
    # lhs_ref : (N, Lrows, 9*C) f32  pre-interleaved tap windows (tap-major)
    # wc_ref  : (9*C, F)        f32  conv taps, tap-major / channel-minor
    # bc_ref  : (1, F)          f32  conv bias
    Wp = W + 2
    Lrows = H * Wp
    inv_hw = 1.0 / (H * W)

    # Valid-column mask for the flattened (H, W+2) compute grid — in-kernel
    # iota, free VPU filler, no extra input DMA.
    col = jax.lax.broadcasted_iota(jnp.int32, (Lrows, 1), 0) % Wp
    mask = (col < W).astype(jnp.float32)                        # (Lrows, 1)

    wc = wc_ref[...]
    bc = bc_ref[...]

    # Backbone stand-in: one K=9*C matmul per batch element; bias + ReLU +
    # mask + GAP fused; accumulation stays in vregs (no VMEM scratch RMW).
    rows = []
    for n in range(N):                                          # N tiny, static
        y = jnp.dot(lhs_ref[n], wc, preferred_element_type=jnp.float32)
        y = jnp.maximum(y + bc, 0.0) * mask                     # (Lrows, F)
        rows.append(jnp.sum(y, axis=0, keepdims=True) * inv_hw)
    fts = jnp.concatenate(rows, axis=0)                         # (N, F)
    fts_ref[...] = fts

    # fc head: Linear -> ReLU -> Dropout(eval: identity) -> BN (folded) -> Linear
    h = jnp.dot(fts, w1_ref[...], preferred_element_type=jnp.float32) + b1_ref[...]
    h = jnp.maximum(h, 0.0)
    logits_ref[...] = jnp.dot(h, w2_ref[...],
                              preferred_element_type=jnp.float32) + b2_ref[...]

    # embedding head: Linear -> LeakyReLU(0.1) -> Linear -> L2 normalize
    e = jnp.dot(fts, we1_ref[...], preferred_element_type=jnp.float32) + be1_ref[...]
    e = jnp.where(e > 0.0, e, 0.1 * e)
    z = jnp.dot(e, we2_ref[...], preferred_element_type=jnp.float32) + be2_ref[...]
    # Padded output columns of z are exactly zero -> they don't affect the norm.
    ss = jnp.sum(z * z, axis=-1, keepdims=True)
    inv = jax.lax.rsqrt(jnp.maximum(ss, 1e-24))   # clamp; pure-JAX ref unclamped
    emb_ref[...] = z * inv


# ---------------------------------------------------------------------------
# One-time, input-independent parameter prep (hoisted out of the forward jit)
# ---------------------------------------------------------------------------
def prepare_params(p):
    f32 = jnp.float32
    F = p["conv_w"].shape[0]
    C = p["conv_w"].shape[1]
    F4 = p["fc1_w"].shape[0]
    num_classes = p["fc2_w"].shape[0]
    low3 = p["emb1_w"].shape[0]
    low = p["emb2_w"].shape[0]
    c_pad = _round_up(num_classes, 128)
    l_pad = _round_up(low, 128)

    # conv: OIHW -> (kh, kw, C_in, F) -> (9*C, F), tap-major / channel-minor
    # (matches the wrapper's tap-interleaved lhs layout).
    wc = jnp.transpose(p["conv_w"], (2, 3, 1, 0)).reshape(9 * C, F).astype(f32)
    bc = p["conv_b"].reshape(1, F).astype(f32)

    # fc1 (PyTorch Linear stores weights as [out, in])
    w1 = p["fc1_w"].T.astype(f32)                                # (F, F4)
    b1 = p["fc1_b"].reshape(1, F4).astype(f32)

    # eval-mode BatchNorm1d folded into fc2's input side:
    #   logits = (h*s + t) @ W2^T + b2 = h @ (s[:,None]*W2^T) + (t@W2^T + b2)
    s = p["bn_gamma"] * jax.lax.rsqrt(p["bn_var"] + 1e-5)
    t = p["bn_beta"] - p["bn_mean"] * s
    w2 = s[:, None] * p["fc2_w"].T.astype(f32)                   # (F4, classes)
    b2 = t @ p["fc2_w"].T.astype(f32) + p["fc2_b"]
    w2 = jnp.pad(w2, ((0, 0), (0, c_pad - num_classes))).astype(f32)
    b2 = jnp.pad(b2, (0, c_pad - num_classes)).reshape(1, c_pad).astype(f32)

    # embedding head (output dim zero-padded to a lane-dense width)
    we1 = p["emb1_w"].T.astype(f32)                              # (F, 3L)
    be1 = p["emb1_b"].reshape(1, low3).astype(f32)
    we2 = jnp.pad(p["emb2_w"].T.astype(f32), ((0, 0), (0, l_pad - low)))
    be2 = jnp.pad(p["emb2_b"].astype(f32), (0, l_pad - low)).reshape(1, l_pad)

    prepared = dict(wc=wc, bc=bc, w1=w1, b1=b1, w2=w2, b2=b2,
                    we1=we1, be1=be1, we2=we2, be2=be2)
    meta = dict(num_classes=num_classes, low_dim=low)
    return prepared, meta


# ---------------------------------------------------------------------------
# Forward (jit this; parameter prep already hoisted into prepare_params)
# ---------------------------------------------------------------------------
def modelwemb_forward(x_nchw, prepared, *, num_classes, low_dim):
    """Eval-mode ModelwEmb.forward: returns (logits, fts, fts_low)."""
    N, C, H, W = x_nchw.shape
    F = prepared["bc"].shape[1]
    F4 = prepared["w1"].shape[1]
    c_pad = prepared["w2"].shape[1]
    low3 = prepared["we1"].shape[1]
    l_pad = prepared["we2"].shape[1]

    Wp = W + 2
    Lrows = H * Wp
    # "same" pad of 1 on each side plus one guard row so the (kh=2, kw=2)
    # shifted window stays in bounds; guard-row reads only hit masked columns.
    S_pad = (H + 3) * Wp
    max_start = 2 * Wp + 2
    assert max_start + Lrows <= S_pad, "shifted-window guard rows insufficient"

    # Input prep: NCHW -> NHWC, zero pad, flatten spatial, pre-interleave the
    # 9 tap windows along the channel axis (tap-major).  XLA fuses this into
    # one small copy; the kernel then does a single K=9*C matmul per batch.
    x = jnp.transpose(x_nchw, (0, 2, 3, 1)).astype(jnp.float32)
    x = jnp.pad(x, ((0, 0), (1, 2), (1, 1), (0, 0)))
    x = x.reshape(N, S_pad, C)
    lhs = jnp.concatenate(
        [x[:, kh * Wp + kw:kh * Wp + kw + Lrows, :]
         for kh in range(3) for kw in range(3)], axis=-1)        # (N,Lrows,9C)

    kernel = functools.partial(_fused_kernel, N=N, H=H, W=W)

    def full(shape):
        return pl.BlockSpec(shape, lambda i, _s=shape: (0,) * len(_s))

    logits_pad, fts, emb_pad = pl.pallas_call(
        kernel,
        out_shape=(jax.ShapeDtypeStruct((N, c_pad), jnp.float32),
                   jax.ShapeDtypeStruct((N, F), jnp.float32),
                   jax.ShapeDtypeStruct((N, l_pad), jnp.float32)),
        grid=(1,),
        in_specs=[full((N, Lrows, 9 * C)),
                  full((9 * C, F)), full((1, F)),
                  full((F, F4)), full((1, F4)),
                  full((F4, c_pad)), full((1, c_pad)),
                  full((F, low3)), full((1, low3)),
                  full((low3, l_pad)), full((1, l_pad))],
        out_specs=(full((N, c_pad)), full((N, F)), full((N, l_pad))),
        compiler_params=pltpu.CompilerParams(
            dimension_semantics=("arbitrary",)),
    )(lhs, prepared["wc"], prepared["bc"],
      prepared["w1"], prepared["b1"], prepared["w2"], prepared["b2"],
      prepared["we1"], prepared["be1"], prepared["we2"], prepared["be2"])

    return logits_pad[:, :num_classes], fts, emb_pad[:, :low_dim]


# ---------------------------------------------------------------------------
# Pure-JAX f32 reference (same stand-in backbone), used only for a sanity check
# ---------------------------------------------------------------------------
def _reference_forward(x, p):
    y = jax.lax.conv_general_dilated(
        x.astype(jnp.float32), p["conv_w"].astype(jnp.float32),
        window_strides=(1, 1), padding="SAME",
        dimension_numbers=("NCHW", "OIHW", "NCHW"))
    y = jax.nn.relu(y + p["conv_b"][None, :, None, None])
    fts = jnp.mean(y, axis=(2, 3))
    h = jax.nn.relu(fts @ p["fc1_w"].T + p["fc1_b"])
    h = (h - p["bn_mean"]) * jax.lax.rsqrt(p["bn_var"] + 1e-5) \
        * p["bn_gamma"] + p["bn_beta"]
    logits = h @ p["fc2_w"].T + p["fc2_b"]
    e = fts @ p["emb1_w"].T + p["emb1_b"]
    e = jnp.where(e > 0, e, 0.1 * e)
    z = e @ p["emb2_w"].T + p["emb2_b"]
    fts_low = z / jnp.sqrt(jnp.sum(z * z, axis=1, keepdims=True))
    return logits, fts, fts_low


if __name__ == "__main__":
    key = jax.random.PRNGKey(0)
    ks = jax.random.split(key, 15)

    N, C_IN, H, W = 2, 4, 16, 16
    F = 128                       # stand-in backbone feature width (in_fts)
    NUM_CLASSES = 4
    LOW_DIM = 64                  # low_dim; k = 3 -> hidden width 3*low_dim
    F4 = F // 4

    def nrm(k, shape, scale=0.1):
        return scale * jax.random.normal(k, shape, jnp.float32)

    params = {
        "conv_w": nrm(ks[0], (F, C_IN, 3, 3)),
        "conv_b": nrm(ks[1], (F,)),
        "fc1_w": nrm(ks[2], (F4, F)),
        "fc1_b": nrm(ks[3], (F4,)),
        "bn_gamma": 1.0 + nrm(ks[4], (F4,)),
        "bn_beta": nrm(ks[5], (F4,)),
        "bn_mean": nrm(ks[6], (F4,)),
        "bn_var": jax.random.uniform(ks[7], (F4,), jnp.float32, 0.5, 1.5),
        "fc2_w": nrm(ks[8], (NUM_CLASSES, F4)),
        "fc2_b": nrm(ks[9], (NUM_CLASSES,)),
        "emb1_w": nrm(ks[10], (3 * LOW_DIM, F)),
        "emb1_b": nrm(ks[11], (3 * LOW_DIM,)),
        "emb2_w": nrm(ks[12], (LOW_DIM, 3 * LOW_DIM)),
        "emb2_b": nrm(ks[13], (LOW_DIM,)),
    }
    x = jax.random.normal(ks[14], (N, C_IN, H, W), jnp.float32)

    # One-time parameter prep (hoisted out of the per-forward jit).
    prepared, meta = prepare_params(params)
    prepared = jax.tree_util.tree_map(jnp.asarray, prepared)

    fwd = jax.jit(functools.partial(modelwemb_forward,
                                    num_classes=meta["num_classes"],
                                    low_dim=meta["low_dim"]))
    logits, fts, fts_low = fwd(x, prepared)
    jax.block_until_ready((logits, fts, fts_low))

    # shape / sanity checks
    assert logits.shape == (N, NUM_CLASSES)
    assert fts.shape == (N, F)
    assert fts_low.shape == (N, LOW_DIM)
    assert bool(jnp.all(jnp.isfinite(logits)))
    assert bool(jnp.all(jnp.isfinite(fts)))
    assert bool(jnp.all(jnp.isfinite(fts_low)))
    norm_err = float(jnp.max(jnp.abs(jnp.sum(fts_low * fts_low, axis=1) - 1.0)))
    assert norm_err < 1e-3

    # numerical sanity vs. pure-JAX f32 reference
    r_logits, r_fts, r_low = _reference_forward(x, params)
    assert float(jnp.max(jnp.abs(fts - r_fts))) < 5e-2
    assert float(jnp.max(jnp.abs(logits - r_logits))) < 5e-2
    assert float(jnp.max(jnp.abs(fts_low - r_low))) < 5e-2

    print("KERNEL_OK")
</pallas_src>

<mosaic_0001>
module attributes {stable_mosaic.version = 11 : i64} {
  func.func @_fused_kernel(%arg0: i32, %arg1: memref<2x288x36xf32, #tpu.memory_space<vmem>>, %arg2: memref<36x128xf32, #tpu.memory_space<vmem>>, %arg3: memref<1x128xf32, #tpu.memory_space<vmem>>, %arg4: memref<128x32xf32, #tpu.memory_space<vmem>>, %arg5: memref<1x32xf32, #tpu.memory_space<vmem>>, %arg6: memref<32x128xf32, #tpu.memory_space<vmem>>, %arg7: memref<1x128xf32, #tpu.memory_space<vmem>>, %arg8: memref<128x192xf32, #tpu.memory_space<vmem>>, %arg9: memref<1x192xf32, #tpu.memory_space<vmem>>, %arg10: memref<192x128xf32, #tpu.memory_space<vmem>>, %arg11: memref<1x128xf32, #tpu.memory_space<vmem>>, %arg12: memref<2x128xf32, #tpu.memory_space<vmem>>, %arg13: memref<2x128xf32, #tpu.memory_space<vmem>>, %arg14: memref<2x128xf32, #tpu.memory_space<vmem>>) attributes {dimension_semantics = [#tpu.dimension_semantics<arbitrary>], iteration_bounds = array<i64: 1>, scalar_prefetch = 0 : i64, scratch_operands = 0 : i64, tpu.core_type = #tpu.core_type<tc>, window_params = [{pipeline_mode = #tpu.pipeline_mode<synchronous>, transform_indices = @transform_0, window_bounds = array<i64: 2, 288, 36>}, {pipeline_mode = #tpu.pipeline_mode<synchronous>, transform_indices = @transform_1, window_bounds = array<i64: 36, 128>}, {pipeline_mode = #tpu.pipeline_mode<synchronous>, transform_indices = @transform_2, window_bounds = array<i64: 1, 128>}, {pipeline_mode = #tpu.pipeline_mode<synchronous>, transform_indices = @transform_3, window_bounds = array<i64: 128, 32>}, {pipeline_mode = #tpu.pipeline_mode<synchronous>, transform_indices = @transform_4, window_bounds = array<i64: 1, 32>}, {pipeline_mode = #tpu.pipeline_mode<synchronous>, transform_indices = @transform_5, window_bounds = array<i64: 32, 128>}, {pipeline_mode = #tpu.pipeline_mode<synchronous>, transform_indices = @transform_6, window_bounds = array<i64: 1, 128>}, {pipeline_mode = #tpu.pipeline_mode<synchronous>, transform_indices = @transform_7, window_bounds = array<i64: 128, 192>}, {pipeline_mode = #tpu.pipeline_mode<synchronous>, transform_indices = @transform_8, window_bounds = array<i64: 1, 192>}, {pipeline_mode = #tpu.pipeline_mode<synchronous>, transform_indices = @transform_9, window_bounds = array<i64: 192, 128>}, {pipeline_mode = #tpu.pipeline_mode<synchronous>, transform_indices = @transform_10, window_bounds = array<i64: 1, 128>}, {pipeline_mode = #tpu.pipeline_mode<synchronous>, transform_indices = @transform_11, window_bounds = array<i64: 2, 128>}, {pipeline_mode = #tpu.pipeline_mode<synchronous>, transform_indices = @transform_12, window_bounds = array<i64: 2, 128>}, {pipeline_mode = #tpu.pipeline_mode<synchronous>, transform_indices = @transform_13, window_bounds = array<i64: 2, 128>}]} {
    %0 = tpu.iota {dimensions = array<i32: 0>} : vector<288x1xi32>
    %c18_i32 = arith.constant 18 : i32
    %c0_i32 = arith.constant 0 : i32
    %1 = arith.cmpi eq, %c18_i32, %c0_i32 : i32
    %c1_i32 = arith.constant 1 : i32
    %2 = arith.select %1, %c1_i32, %c18_i32 : i32
    %3 = vector.broadcast %2 : i32 to vector<288x1xi32>
    %4 = arith.remsi %0, %3 : vector<288x1xi32>
    %c0_i32_0 = arith.constant 0 : i32
    %5 = vector.broadcast %c0_i32_0 : i32 to vector<288x1xi32>
    %6 = arith.cmpi ne, %4, %5 : vector<288x1xi32>
    %c0_i32_1 = arith.constant 0 : i32
    %7 = vector.broadcast %c0_i32_1 : i32 to vector<288x1xi32>
    %8 = arith.cmpi slt, %4, %7 : vector<288x1xi32>
    %c0_i32_2 = arith.constant 0 : i32
    %9 = arith.cmpi slt, %2, %c0_i32_2 : i32
    %10 = vector.broadcast %9 : i1 to vector<288x1xi1>
    %11 = vector.broadcast %10 : vector<288x1xi1> to vector<288x1xi1>
    %12 = arith.xori %8, %11 : vector<288x1xi1>
    %13 = arith.andi %12, %6 : vector<288x1xi1>
    %14 = vector.broadcast %2 : i32 to vector<288x1xi32>
    %15 = arith.addi %4, %14 : vector<288x1xi32>
    %16 = arith.select %13, %15, %4 : vector<288x1xi1>, vector<288x1xi32>
    %c16_i32 = arith.constant 16 : i32
    %17 = vector.broadcast %c16_i32 : i32 to vector<288x1xi32>
    %18 = arith.cmpi slt, %16, %17 : vector<288x1xi32>
    %19 = arith.extui %18 : vector<288x1xi1> to vector<288x1xi32>
    %20 = arith.sitofp %19 : vector<288x1xi32> to vector<288x1xf32>
    %c0 = arith.constant 0 : index
    %c0_3 = arith.constant 0 : index
    %21 = vector.load %arg2[%c0, %c0_3] : memref<36x128xf32, #tpu.memory_space<vmem>>, vector<36x128xf32>
    %c0_4 = arith.constant 0 : index
    %c0_5 = arith.constant 0 : index
    %22 = vector.load %arg3[%c0_4, %c0_5] : memref<1x128xf32, #tpu.memory_space<vmem>>, vector<1x128xf32>
    %c0_6 = arith.constant 0 : index
    %c0_7 = arith.constant 0 : index
    %c0_8 = arith.constant 0 : index
    %23 = vector.load %arg1[%c0_6, %c0_7, %c0_8] : memref<2x288x36xf32, #tpu.memory_space<vmem>>, vector<1x288x36xf32>
    %24 = vector.shape_cast %23 : vector<1x288x36xf32> to vector<288x36xf32>
    %cst = arith.constant dense<0.000000e+00> : vector<288x128xf32>
    %25 = tpu.matmul %24, %21, %cst {dimension_numbers = #tpu.dot_dimension_numbers<[1], [0], [0], [1], [0, 0, 1, 1], [], []>} : vector<288x36xf32>, vector<36x128xf32>, vector<288x128xf32> -> vector<288x128xf32>
    %26 = vector.broadcast %22 : vector<1x128xf32> to vector<288x128xf32>
    %27 = arith.addf %25, %26 : vector<288x128xf32>
    %cst_9 = arith.constant 0.000000e+00 : f32
    %28 = vector.broadcast %cst_9 : f32 to vector<288x128xf32>
    %29 = arith.maximumf %27, %28 : vector<288x128xf32>
    %30 = vector.broadcast %20 : vector<288x1xf32> to vector<288x128xf32>
    %31 = arith.mulf %29, %30 : vector<288x128xf32>
    %cst_10 = arith.constant dense<0.000000e+00> : vector<128xf32>
    %32 = vector.multi_reduction <add>, %31, %cst_10 [0] : vector<288x128xf32> to vector<128xf32>
    %33 = vector.shape_cast %32 : vector<128xf32> to vector<1x128xf32>
    %cst_11 = arith.constant 3.906250e-03 : f32
    %34 = vector.broadcast %cst_11 : f32 to vector<1x128xf32>
    %35 = arith.mulf %33, %34 : vector<1x128xf32>
    %c1 = arith.constant 1 : index
    %c0_12 = arith.constant 0 : index
    %c0_13 = arith.constant 0 : index
    %36 = vector.load %arg1[%c1, %c0_12, %c0_13] : memref<2x288x36xf32, #tpu.memory_space<vmem>>, vector<1x288x36xf32>
    %37 = vector.shape_cast %36 : vector<1x288x36xf32> to vector<288x36xf32>
    %cst_14 = arith.constant dense<0.000000e+00> : vector<288x128xf32>
    %38 = tpu.matmul %37, %21, %cst_14 {dimension_numbers = #tpu.dot_dimension_numbers<[1], [0], [0], [1], [0, 0, 1, 1], [], []>} : vector<288x36xf32>, vector<36x128xf32>, vector<288x128xf32> -> vector<288x128xf32>
    %39 = vector.broadcast %22 : vector<1x128xf32> to vector<288x128xf32>
    %40 = arith.addf %38, %39 : vector<288x128xf32>
    %cst_15 = arith.constant 0.000000e+00 : f32
    %41 = vector.broadcast %cst_15 : f32 to vector<288x128xf32>
    %42 = arith.maximumf %40, %41 : vector<288x128xf32>
    %43 = vector.broadcast %20 : vector<288x1xf32> to vector<288x128xf32>
    %44 = arith.mulf %42, %43 : vector<288x128xf32>
    %cst_16 = arith.constant dense<0.000000e+00> : vector<128xf32>
    %45 = vector.multi_reduction <add>, %44, %cst_16 [0] : vector<288x128xf32> to vector<128xf32>
    %46 = vector.shape_cast %45 : vector<128xf32> to vector<1x128xf32>
    %cst_17 = arith.constant 3.906250e-03 : f32
    %47 = vector.broadcast %cst_17 : f32 to vector<1x128xf32>
    %48 = arith.mulf %46, %47 : vector<1x128xf32>
    %49 = tpu.concatenate %35, %48 in 0 : vector<1x128xf32>, vector<1x128xf32> -> vector<2x128xf32>
    %c0_18 = arith.constant 0 : index
    %c0_19 = arith.constant 0 : index
    %50 = vector.load %arg13[%c0_18, %c0_19] : memref<2x128xf32, #tpu.memory_space<vmem>>, vector<2x128xf32>
    tpu.vector_store %arg13[%c0_18, %c0_19], %49 {strides = array<i32>} : memref<2x128xf32, #tpu.memory_space<vmem>>, vector<2x128xf32>,
    %c0_20 = arith.constant 0 : index
    %c0_21 = arith.constant 0 : index
    %51 = vector.load %arg4[%c0_20, %c0_21] : memref<128x32xf32, #tpu.memory_space<vmem>>, vector<128x32xf32>
    %cst_22 = arith.constant dense<0.000000e+00> : vector<2x32xf32>
    %52 = tpu.matmul %49, %51, %cst_22 {dimension_numbers = #tpu.dot_dimension_numbers<[1], [0], [0], [1], [0, 0, 1, 1], [], []>} : vector<2x128xf32>, vector<128x32xf32>, vector<2x32xf32> -> vector<2x32xf32>
    %c0_23 = arith.constant 0 : index
    %c0_24 = arith.constant 0 : index
    %53 = vector.load %arg5[%c0_23, %c0_24] : memref<1x32xf32, #tpu.memory_space<vmem>>, vector<1x32xf32>
    %54 = vector.broadcast %53 : vector<1x32xf32> to vector<2x32xf32>
    %55 = arith.addf %52, %54 : vector<2x32xf32>
    %cst_25 = arith.constant 0.000000e+00 : f32
    %56 = vector.broadcast %cst_25 : f32 to vector<2x32xf32>
    %57 = arith.maximumf %55, %56 : vector<2x32xf32>
    %c0_26 = arith.constant 0 : index
    %c0_27 = arith.constant 0 : index
    %58 = vector.load %arg6[%c0_26, %c0_27] : memref<32x128xf32, #tpu.memory_space<vmem>>, vector<32x128xf32>
    %cst_28 = arith.constant dense<0.000000e+00> : vector<2x128xf32>
    %59 = tpu.matmul %57, %58, %cst_28 {dimension_numbers = #tpu.dot_dimension_numbers<[1], [0], [0], [1], [0, 0, 1, 1], [], []>} : vector<2x32xf32>, vector<32x128xf32>, vector<2x128xf32> -> vector<2x128xf32>
    %c0_29 = arith.constant 0 : index
    %c0_30 = arith.constant 0 : index
    %60 = vector.load %arg7[%c0_29, %c0_30] : memref<1x128xf32, #tpu.memory_space<vmem>>, vector<1x128xf32>
    %61 = vector.broadcast %60 : vector<1x128xf32> to vector<2x128xf32>
    %62 = arith.addf %59, %61 : vector<2x128xf32>
    %c0_31 = arith.constant 0 : index
    %c0_32 = arith.constant 0 : index
    %63 = vector.load %arg12[%c0_31, %c0_32] : memref<2x128xf32, #tpu.memory_space<vmem>>, vector<2x128xf32>
    tpu.vector_store %arg12[%c0_31, %c0_32], %62 {strides = array<i32>} : memref<2x128xf32, #tpu.memory_space<vmem>>, vector<2x128xf32>,
    %c0_33 = arith.constant 0 : index
    %c0_34 = arith.constant 0 : index
    %64 = vector.load %arg8[%c0_33, %c0_34] : memref<128x192xf32, #tpu.memory_space<vmem>>, vector<128x192xf32>
    %cst_35 = arith.constant dense<0.000000e+00> : vector<2x192xf32>
    %65 = tpu.matmul %49, %64, %cst_35 {dimension_numbers = #tpu.dot_dimension_numbers<[1], [0], [0], [1], [0, 0, 1, 1], [], []>} : vector<2x128xf32>, vector<128x192xf32>, vector<2x192xf32> -> vector<2x192xf32>
    %c0_36 = arith.constant 0 : index
    %c0_37 = arith.constant 0 : index
    %66 = vector.load %arg9[%c0_36, %c0_37] : memref<1x192xf32, #tpu.memory_space<vmem>>, vector<1x192xf32>
    %67 = vector.broadcast %66 : vector<1x192xf32> to vector<2x192xf32>
    %68 = arith.addf %65, %67 : vector<2x192xf32>
    %cst_38 = arith.constant 0.000000e+00 : f32
    %69 = vector.broadcast %cst_38 : f32 to vector<2x192xf32>
    %70 = arith.cmpf ogt, %68, %69 : vector<2x192xf32>
    %cst_39 = arith.constant 1.000000e-01 : f32
    %71 = vector.broadcast %cst_39 : f32 to vector<2x192xf32>
    %72 = arith.mulf %71, %68 : vector<2x192xf32>
    %73 = arith.select %70, %68, %72 : vector<2x192xi1>, vector<2x192xf32>
    %c0_40 = arith.constant 0 : index
    %c0_41 = arith.constant 0 : index
    %74 = vector.load %arg10[%c0_40, %c0_41] : memref<192x128xf32, #tpu.memory_space<vmem>>, vector<192x128xf32>
    %cst_42 = arith.constant dense<0.000000e+00> : vector<2x128xf32>
    %75 = tpu.matmul %73, %74, %cst_42 {dimension_numbers = #tpu.dot_dimension_numbers<[1], [0], [0], [1], [0, 0, 1, 1], [], []>} : vector<2x192xf32>, vector<192x128xf32>, vector<2x128xf32> -> vector<2x128xf32>
    %c0_43 = arith.constant 0 : index
    %c0_44 = arith.constant 0 : index
    %76 = vector.load %arg11[%c0_43, %c0_44] : memref<1x128xf32, #tpu.memory_space<vmem>>, vector<1x128xf32>
    %77 = vector.broadcast %76 : vector<1x128xf32> to vector<2x128xf32>
    %78 = arith.addf %75, %77 : vector<2x128xf32>
    %79 = arith.mulf %78, %78 : vector<2x128xf32>
    %cst_45 = arith.constant dense<0.000000e+00> : vector<2xf32>
    %80 = vector.multi_reduction <add>, %79, %cst_45 [1] : vector<2x128xf32> to vector<2xf32>
    %81 = vector.shape_cast %80 : vector<2xf32> to vector<2x1xf32>
    %cst_46 = arith.constant 1.000000e-24 : f32
    %82 = vector.broadcast %cst_46 : f32 to vector<2x1xf32>
    %83 = arith.maximumf %81, %82 : vector<2x1xf32>
    %84 = math.rsqrt %83 : vector<2x1xf32>
    %85 = vector.broadcast %84 : vector<2x1xf32> to vector<2x128xf32>
    %86 = arith.mulf %78, %85 : vector<2x128xf32>
    %c0_47 = arith.constant 0 : index
    %c0_48 = arith.constant 0 : index
    %87 = vector.load %arg14[%c0_47, %c0_48] : memref<2x128xf32, #tpu.memory_space<vmem>>, vector<2x128xf32>
    tpu.vector_store %arg14[%c0_47, %c0_48], %86 {strides = array<i32>} : memref<2x128xf32, #tpu.memory_space<vmem>>, vector<2x128xf32>,
    return
  }
  func.func @transform_0(%arg0: i32) -> (i32, i32, i32) {
    %c0_i32 = arith.constant 0 : i32
    %c0_i32_0 = arith.constant 0 : i32
    %c0_i32_1 = arith.constant 0 : i32
    %c0_i32_2 = arith.constant 0 : i32
    return %c0_i32, %c0_i32_0, %c0_i32_1 : i32, i32, i32
  }
  func.func @transform_1(%arg0: i32) -> (i32, i32) {
    %c0_i32 = arith.constant 0 : i32
    %c0_i32_0 = arith.constant 0 : i32
    %c0_i32_1 = arith.constant 0 : i32
    return %c0_i32, %c0_i32_0 : i32, i32
  }
  func.func @transform_2(%arg0: i32) -> (i32, i32) {
    %c0_i32 = arith.constant 0 : i32
    %c0_i32_0 = arith.constant 0 : i32
    %c0_i32_1 = arith.constant 0 : i32
    return %c0_i32, %c0_i32_0 : i32, i32
  }
  func.func @transform_3(%arg0: i32) -> (i32, i32) {
    %c0_i32 = arith.constant 0 : i32
    %c0_i32_0 = arith.constant 0 : i32
    %c0_i32_1 = arith.constant 0 : i32
    return %c0_i32, %c0_i32_0 : i32, i32
  }
  func.func @transform_4(%arg0: i32) -> (i32, i32) {
    %c0_i32 = arith.constant 0 : i32
    %c0_i32_0 = arith.constant 0 : i32
    %c0_i32_1 = arith.constant 0 : i32
    return %c0_i32, %c0_i32_0 : i32, i32
  }
  func.func @transform_5(%arg0: i32) -> (i32, i32) {
    %c0_i32 = arith.constant 0 : i32
    %c0_i32_0 = arith.constant 0 : i32
    %c0_i32_1 = arith.constant 0 : i32
    return %c0_i32, %c0_i32_0 : i32, i32
  }
  func.func @transform_6(%arg0: i32) -> (i32, i32) {
    %c0_i32 = arith.constant 0 : i32
    %c0_i32_0 = arith.constant 0 : i32
    %c0_i32_1 = arith.constant 0 : i32
    return %c0_i32, %c0_i32_0 : i32, i32
  }
  func.func @transform_7(%arg0: i32) -> (i32, i32) {
    %c0_i32 = arith.constant 0 : i32
    %c0_i32_0 = arith.constant 0 : i32
    %c0_i32_1 = arith.constant 0 : i32
    return %c0_i32, %c0_i32_0 : i32, i32
  }
  func.func @transform_8(%arg0: i32) -> (i32, i32) {
    %c0_i32 = arith.constant 0 : i32
    %c0_i32_0 = arith.constant 0 : i32
    %c0_i32_1 = arith.constant 0 : i32
    return %c0_i32, %c0_i32_0 : i32, i32
  }
  func.func @transform_9(%arg0: i32) -> (i32, i32) {
    %c0_i32 = arith.constant 0 : i32
    %c0_i32_0 = arith.constant 0 : i32
    %c0_i32_1 = arith.constant 0 : i32
    return %c0_i32, %c0_i32_0 : i32, i32
  }
  func.func @transform_10(%arg0: i32) -> (i32, i32) {
    %c0_i32 = arith.constant 0 : i32
    %c0_i32_0 = arith.constant 0 : i32
    %c0_i32_1 = arith.constant 0 : i32
    return %c0_i32, %c0_i32_0 : i32, i32
  }
  func.func @transform_11(%arg0: i32) -> (i32, i32) {
    %c0_i32 = arith.constant 0 : i32
    %c0_i32_0 = arith.constant 0 : i32
    %c0_i32_1 = arith.constant 0 : i32
    return %c0_i32, %c0_i32_0 : i32, i32
  }
  func.func @transform_12(%arg0: i32) -> (i32, i32) {
    %c0_i32 = arith.constant 0 : i32
    %c0_i32_0 = arith.constant 0 : i32
    %c0_i32_1 = arith.constant 0 : i32
    return %c0_i32, %c0_i32_0 : i32, i32
  }
  func.func @transform_13(%arg0: i32) -> (i32, i32) {
    %c0_i32 = arith.constant 0 : i32
    %c0_i32_0 = arith.constant 0 : i32
    %c0_i32_1 = arith.constant 0 : i32
    return %c0_i32, %c0_i32_0 : i32, i32
  }
}

</mosaic_0001>

<bundles_post_ra>
// kernel: modelwemb_forward.1
= control target key start
LH: loop header
LB: loop body
LE: loop exit
PB: predicated region body
PF: predicated region fallthrough
CT: control target
= control target key end

     0   :  { %19 = vsyncpa [#allocation3], 0  ;;  %vm812_vm0 = vcmask 293888   ;;  %vm921_vm1 = vcmask 1043456   ;;  %s4935_s0 = inlined_call_operand.vmem [shape: f32[2,288,36], index: 0, kind: input, shape index: {}]   ;;  %s4936_s1 = inlined_call_operand.vmem [shape: f32[36,128], index: 1, kind: input, shape index: {}]   ;;  %s4937_s2 = inlined_call_operand.vmem [shape: f32[1,128], index: 2, kind: input, shape index: {}]   ;;  %s4938_s3 = inlined_call_operand.vmem [shape: f32[128,32], index: 3, kind: input, shape index: {}]   ;;  %s4939_s4 = inlined_call_operand.vmem [shape: f32[1,32], index: 4, kind: input, shape index: {}]   ;;  %s4940_s5 = inlined_call_operand.vmem [shape: f32[32,128], index: 5, kind: input, shape index: {}]   ;;  %s4941_s6 = inlined_call_operand.vmem [shape: f32[1,128], index: 6, kind: input, shape index: {}]   ;;  %s4942_s7 = inlined_call_operand.vmem [shape: f32[128,192], index: 7, kind: input, shape index: {}]   ;;  %s4943_s8 = inlined_call_operand.vmem [shape: f32[1,192], index: 8, kind: input, shape index: {}]   ;;  %s4944_s9 = inlined_call_operand.vmem [shape: f32[192,128], index: 9, kind: input, shape index: {}]   ;;  %s4945_s10 = inlined_call_operand.vmem [shape: f32[1,128], index: 10, kind: input, shape index: {}]   ;;  %s4946_s11 = inlined_call_operand.hbm [shape: f32[2,128], index: 11, kind: output, shape index: {0}]   ;;  %s4947_s12 = inlined_call_operand.hbm [shape: f32[2,128], index: 12, kind: output, shape index: {1}]   ;;  %s4948_s13 = inlined_call_operand.hbm [shape: f32[2,128], index: 13, kind: output, shape index: {2}]  }
   0x1   :  { %v764_v0 = vld [vmem:[%s4936_s1] sm:$0xff]  ;;  %v765_v1 = vld [vmem:[%s4936_s1 + $0x8] sm:$0xff]  ;;  %v766_v2 = vld [vmem:[%s4936_s1 + $0x10] sm:$0xff] }
   0x2   :  { %v2677_v3 = vpack.c.bf16 %v765_v1, %v764_v0  ;;  %v767_v4 = vld [vmem:[%s4936_s1 + $0x18] sm:$0xff]  ;;  %v770_v5 = vld [vmem:[%s4935_s0] sm:$0xff]  ;;  %v796_v7 = vld [vmem:[%s4935_s0 + $0xd0] sm:$0xff] }
   0x3   :  { %v2681_v6 = vpack.c.bf16 %v767_v4, %v766_v2  ;;  %2513 = vmatprep.mubr.msk.f32.mxu0 %vm812_vm0, %v770_v5  ;;  %v768_v8 = vld [vmem:[%s4936_s1 + $0x20] sm:$0xf]  ;;  %2552 = vmatprep.mubr.msk.f32.mxu1 %vm812_vm0, %v796_v7  ;;  %v771_v9 = vld [vmem:[%s4935_s0 + $0x8] sm:$0xff]  ;;  %v797_v10 = vld [vmem:[%s4935_s0 + $0xd8] sm:$0xff] }
   0x4   :  { %2678 = vmatprep.subr.bf16.mxu0 %v2677_v3  ;;  %2791 = vmatprep.subr.bf16.mxu1 %v2677_v3  ;;  %v772_v11 = vld [vmem:[%s4935_s0 + $0x10] sm:$0xff]  ;;  %v798_v12 = vld [vmem:[%s4935_s0 + $0xe0] sm:$0xff]  ;;  %v773_v13 = vld [vmem:[%s4935_s0 + $0x18] sm:$0xff] }
   0x5   :  { %2680 = vmatpush3.bf16.msra.mxu0 %v2677_v3  ;;  %2794 = vmatpush3.bf16.msra.mxu1 %v2677_v3  ;;  %v799_v14 = vld [vmem:[%s4935_s0 + $0xe8] sm:$0xff]  ;;  %v774_v15 = vld [vmem:[%s4935_s0 + $0x20] sm:$0xff]  ;;  %v800_v16 = vld [vmem:[%s4935_s0 + $0xf0] sm:$0xff] }
   0x6   :  { %2682 = vmatprep.subr.bf16.mxu0 %v2681_v6  ;;  %2792 = vmatprep.subr.bf16.mxu1 %v2681_v6  ;;  %v775_v17 = vld [vmem:[%s4935_s0 + $0x28] sm:$0xff]  ;;  %v801_v18 = vld [vmem:[%s4935_s0 + $0xf8] sm:$0xff]  ;;  %v776_v19 = vld [vmem:[%s4935_s0 + $0x30] sm:$0xff] }
   0x7   :  { %v802_v20 = vld [vmem:[%s4935_s0 + $0x100] sm:$0xff]  ;;  %v777_v21 = vld [vmem:[%s4935_s0 + $0x38] sm:$0xff]  ;;  %v803_v22 = vld [vmem:[%s4935_s0 + $0x108] sm:$0xff] }
   0x8   :  { %v778_v23 = vld [vmem:[%s4935_s0 + $0x40] sm:$0xff]  ;;  %v804_v24 = vld [vmem:[%s4935_s0 + $0x110] sm:$0xff]  ;;  %v779_v25 = vld [vmem:[%s4935_s0 + $0x48] sm:$0xff] }
   0x9   :  { %2684 = vmatpush3.bf16.msra.mxu0 %v2681_v6  ;;  %2795 = vmatpush3.bf16.msra.mxu1 %v2681_v6  ;;  %v805_v26 = vld [vmem:[%s4935_s0 + $0x118] sm:$0xff] }
   0xa   :  { %2511 = vmatprep.subr.msk.mxu0 %vm921_vm1, %v768_v8  ;;  %2793 = vmatprep.subr.msk.mxu1 %vm921_vm1, %v768_v8 }
   0xd   :  { %2512 = vmatpush3.msk.msra.mxu0 %vm921_vm1, %v768_v8  ;;  %2796 = vmatpush3.msk.msra.mxu1 %vm921_vm1, %v768_v8 }
   0xe   :  { %2514 = vmatmul.mubr.msk.f32.vlgmr.msra.gmra.mrb[0].mxu0 %vm812_vm0, %v771_v9  ;;  %2553 = vmatmul.mubr.msk.f32.vlgmr.msra.gmra.mrb[0].mxu1 %vm812_vm0, %v797_v10 }
   0xf   :  { %2686 = vmatprep.subr.bf16.mxu1 %v2677_v3  ;;  %2516 = vmatprep.mubr.msk.f32.mxu0 %vm812_vm0, %v772_v11 }
  0x10   :  { %2688 = vmatpush3.bf16.msra.mxu1 %v2677_v3  ;;  %2555 = vmatprep.mubr.msk.f32.mxu1 %vm812_vm0, %v798_v12 }
  0x11   :  { %2690 = vmatprep.subr.bf16.mxu1 %v2681_v6 }
  0x12   :  { %2517 = vmatmul.mubr.msk.f32.gmra.mrb[2].mxu0 %vm812_vm0, %v773_v13  ;;  %2556 = vmatmul.mubr.msk.f32.gmra.mrb[2].mxu1 %vm812_vm0, %v799_v14 }
  0x13   :  { %2519 = vmatprep.mubr.msk.f32.mxu0 %vm812_vm0, %v774_v15  ;;  %2558 = vmatprep.mubr.msk.f32.mxu1 %vm812_vm0, %v800_v16 }
  0x14   :  { %2692 = vmatpush3.bf16.msra.mxu1 %v2681_v6 }
  0x15   :  { %2575 = vmatprep.subr.msk.mxu1 %vm921_vm1, %v768_v8 }
  0x16   :  { %2520 = vmatmul.mubr.msk.f32.gmra.mrb[4].mxu0 %vm812_vm0, %v775_v17  ;;  %2559 = vmatmul.mubr.msk.f32.gmra.mrb[4].mxu1 %vm812_vm0, %v801_v18 }
  0x17   :  { %2522 = vmatprep.mubr.msk.f32.mxu0 %vm812_vm0, %v776_v19  ;;  %2561 = vmatprep.mubr.msk.f32.mxu1 %vm812_vm0, %v802_v20 }
  0x18   :  { %2576 = vmatpush3.msk.msra.mxu1 %vm921_vm1, %v768_v8 }
  0x1a   :  { %2523 = vmatmul.mubr.msk.f32.gmra.mrb[6].mxu0 %vm812_vm0, %v777_v21  ;;  %2562 = vmatmul.mubr.msk.f32.gmra.mrb[6].mxu1 %vm812_vm0, %v803_v22 }
  0x1b   :  { %2525 = vmatprep.mubr.msk.f32.mxu0 %vm812_vm0, %v778_v23  ;;  %2564 = vmatprep.mubr.msk.f32.mxu1 %vm812_vm0, %v804_v24 }
  0x1c   :  { %20 = vsyncpa [#allocation5], 0  ;;  %v780_v27 = vld [vmem:[%s4935_s0 + $0x50] sm:$0xff]  ;;  %v2321_v28 = vld [vmem:[%s4935_s0 + $0x120] sm:$0xff]  ;;  %v43_v15 = vlaneseq  ;;  %s2951_s23 = smov [#allocation2]  }
  0x1d   :  { %v781_v29 = vld [vmem:[%s4935_s0 + $0x58] sm:$0xff]  ;;  %v2322_v30 = vld [vmem:[%s4935_s0 + $0x128] sm:$0xff]  ;;  %v782_v31 = vld [vmem:[%s4935_s0 + $0x60] sm:$0xff] }
  0x1e   :  { %2526 = vmatmul.mubr.msk.f32.gmra.mrb[8].mxu0 %vm812_vm0, %v779_v25  ;;  %2565 = vmatmul.mubr.msk.f32.gmra.mrb[8].mxu1 %vm812_vm0, %v805_v26  ;;  %v2323_v32 = vld [vmem:[%s4935_s0 + $0x130] sm:$0xff]  ;;  %v783_v33 = vld [vmem:[%s4935_s0 + $0x68] sm:$0xff]  ;;  %v2324_v34 = vld [vmem:[%s4935_s0 + $0x138] sm:$0xff]  ;;  %v3332_v16 = vshrl.u32 %v43_v15, 7 }
  0x1f   :  { %2528 = vmatprep.mubr.msk.f32.mxu0 %vm812_vm0, %v780_v27  ;;  %2577 = vmatprep.mubr.msk.f32.mxu1 %vm812_vm0, %v2321_v28  ;;  %v784_v35 = vld [vmem:[%s4935_s0 + $0x70] sm:$0xff]  ;;  %v2325_v36 = vld [vmem:[%s4935_s0 + $0x140] sm:$0xff]  ;;  %v785_v37 = vld [vmem:[%s4935_s0 + $0x78] sm:$0xff] }
  0x20   :  { %v2326_v38 = vld [vmem:[%s4935_s0 + $0x148] sm:$0xff]  ;;  %v786_v39 = vld [vmem:[%s4935_s0 + $0x80] sm:$0xff]  ;;  %v2327_v40 = vld [vmem:[%s4935_s0 + $0x150] sm:$0xff]  ;;  %4962 = vst [vmem:[#allocation9_spill] sm:$0xff] %v3332_v16  ;;  %v71_v17 = vadd.s32 216, %v3332_v16  ;;  %v70_v18 = vadd.s32 208, %v3332_v16 }
  0x21   :  { %v787_v41 = vld [vmem:[%s4935_s0 + $0x88] sm:$0xff]  ;;  %v2328_v42 = vld [vmem:[%s4935_s0 + $0x158] sm:$0xff]  ;;  %v788_v43 = vld [vmem:[%s4935_s0 + $0x90] sm:$0xff]  ;;  %v45_v19 = vadd.s32 8, %v3332_v16  ;;  %v73_v26 = vadd.s32 232, %v3332_v16 }
  0x22   :  { %2529 = vmatmul.mubr.msk.f32.gmra.mrb[10].mxu0 %vm812_vm0, %v781_v29  ;;  %2578 = vmatmul.mubr.msk.f32.vlgmr.msra.gmra.mrb[10].mxu1 %vm812_vm0, %v2322_v30  ;;  %v2329_v44 = vld [vmem:[%s4935_s0 + $0x160] sm:$0xff]  ;;  %v789_v45 = vld [vmem:[%s4935_s0 + $0x98] sm:$0xff]  ;;  %v2330_v46 = vld [vmem:[%s4935_s0 + $0x168] sm:$0xff]  ;;  %v3337_v20 = vmul.u32.u64.low 3817748708, %v71_v17  ;;  %v3338_v21 = vmul.u32.u64.high 3817748708, %v71_v17, %v3337_v20 }
  0x23   :  { %2531 = vmatprep.mubr.msk.f32.mxu0 %vm812_vm0, %v782_v31  ;;  %2580 = vmatprep.mubr.msk.f32.mxu1 %vm812_vm0, %v2323_v32  ;;  %v790_v47 = vld [vmem:[%s4935_s0 + $0xa0] sm:$0xff]  ;;  %v2331_v48 = vld [vmem:[%s4935_s0 + $0x170] sm:$0xff]  ;;  %v791_v49 = vld [vmem:[%s4935_s0 + $0xa8] sm:$0xff]  ;;  %v3340_v22 = vmul.u32.u64.low 3817748708, %v70_v18  ;;  %v3341_v23 = vmul.u32.u64.high 3817748708, %v70_v18, %v3340_v22 }
  0x24   :  { %v2332_v50 = vld [vmem:[%s4935_s0 + $0x178] sm:$0xff]  ;;  %v792_v51 = vld [vmem:[%s4935_s0 + $0xb0] sm:$0xff]  ;;  %v2333_v52 = vld [vmem:[%s4935_s0 + $0x180] sm:$0xff]  ;;  %v3343_v24 = vmul.u32.u64.low 3817748708, %v45_v19  ;;  %v3344_v25 = vmul.u32.u64.high 3817748708, %v45_v19, %v3343_v24  ;;  %v383_v27 = vshrl.u32 %v3338_v21, 4 }
  0x25   :  { %v793_v53 = vld [vmem:[%s4935_s0 + $0xb8] sm:$0xff]  ;;  %v2334_v54 = vld [vmem:[%s4935_s0 + $0x188] sm:$0xff]  ;;  %v794_v55 = vld [vmem:[%s4935_s0 + $0xc0] sm:$0xff]  ;;  %v3349_v28 = vmul.u32.u64.low 3817748708, %v3332_v16  ;;  %v3350_v29 = vmul.u32.u64.high 3817748708, %v3332_v16, %v3349_v28  ;;  %v372_v30 = vshrl.u32 %v3341_v23, 4 }
  0x26   :  { %2532 = vmatmul.mubr.msk.f32.gmra.mrb[12].mxu0 %vm812_vm0, %v783_v33  ;;  %2581 = vmatmul.mubr.msk.f32.gmra.mrb[12].mxu1 %vm812_vm0, %v2324_v34  ;;  %v2335_v56 = vld [vmem:[%s4935_s0 + $0x190] sm:$0xff]  ;;  %v795_v57 = vld [vmem:[%s4935_s0 + $0xc8] sm:$0xff]  ;;  %v2336_v58 = vld [vmem:[%s4935_s0 + $0x198] sm:$0xff]  ;;  %v3353_v31 = vmul.u32.u64.low 3817748708, %v73_v26  ;;  %v3354_v32 = vmul.u32.u64.high 3817748708, %v73_v26, %v3353_v31  ;;  %v3357_v33 = vadd.s32 16, %v3332_v16 }
  0x27   :  { %2534 = vmatprep.mubr.msk.f32.mxu0 %vm812_vm0, %v784_v35  ;;  %2583 = vmatprep.mubr.msk.f32.mxu1 %vm812_vm0, %v2325_v36  ;;  %v2337_v59 = vld [vmem:[%s4935_s0 + $0x1a0] sm:$0xff]  ;;  %v2338_v60 = vld [vmem:[%s4935_s0 + $0x1a8] sm:$0xff]  ;;  %v2339_v61 = vld [vmem:[%s4935_s0 + $0x1b0] sm:$0xff]  ;;  %v97_v34 = vshrl.u32 %v3344_v25, 4  ;;  %v47_v35 = vadd.s32 24, %v3332_v16  ;;  %v384_v36 = vmul.u32 18, %v383_v27 }
  0x28   :  { %v2340_v62 = vld [vmem:[%s4935_s0 + $0x1b8] sm:$0xff]  ;;  %v2341_v63 = vld [vmem:[%s4935_s0 + $0x1c0] sm:$0xff]  ;;  %v2342_v0 = vld [vmem:[%s4935_s0 + $0x1c8] sm:$0xff] }
  0x29   :  { %v2343_v1 = vld [vmem:[%s4935_s0 + $0x1d0] sm:$0xff]  ;;  %v2344_v2 = vld [vmem:[%s4935_s0 + $0x1d8] sm:$0xff]  ;;  %v2345_v3 = vld [vmem:[%s4935_s0 + $0x1e0] sm:$0xff] }
  0x2a   :  { %2535 = vmatmul.mubr.msk.f32.gmra.mrb[14].mxu0 %vm812_vm0, %v785_v37  ;;  %2584 = vmatmul.mubr.msk.f32.gmra.mrb[14].mxu1 %vm812_vm0, %v2326_v38  ;;  %v2346_v4 = vld [vmem:[%s4935_s0 + $0x1e8] sm:$0xff]  ;;  %v2347_v5 = vld [vmem:[%s4935_s0 + $0x1f0] sm:$0xff]  ;;  %v2348_v6 = vld [vmem:[%s4935_s0 + $0x1f8] sm:$0xff]  ;;  %v373_v37 = vmul.u32 18, %v372_v30 }
  0x2b   :  { %2537 = vmatprep.mubr.msk.f32.mxu0 %vm812_vm0, %v786_v39  ;;  %2586 = vmatprep.mubr.msk.f32.mxu1 %vm812_vm0, %v2327_v40  ;;  %v2349_v7 = vld [vmem:[%s4935_s0 + $0x200] sm:$0xff]  ;;  %v2350_v8 = vld [vmem:[%s4935_s0 + $0x208] sm:$0xff]  ;;  %v2351_v9 = vld [vmem:[%s4935_s0 + $0x210] sm:$0xff]  ;;  %v3362_v38 = vmul.u32.u64.low 3817748708, %v3357_v33  ;;  %v3363_v39 = vmul.u32.u64.high 3817748708, %v3357_v33, %v3362_v38  ;;  %v98_v40 = vmul.u32 18, %v97_v34 }
  0x2c   :  { %v2352_v10 = vld [vmem:[%s4935_s0 + $0x218] sm:$0xff]  ;;  %v2353_v11 = vld [vmem:[%s4935_s0 + $0x220] sm:$0xff]  ;;  %v2354_v12 = vld [vmem:[%s4935_s0 + $0x228] sm:$0xff] }
  0x2d   :  { %v2355_v13 = vld [vmem:[%s4935_s0 + $0x230] sm:$0xff]  ;;  %v2356_v14 = vld [vmem:[%s4935_s0 + $0x238] sm:$0xff] }
  0x2e   :  { %2538 = vmatmul.mubr.msk.f32.gmra.mrb[16].mxu0 %vm812_vm0, %v787_v41  ;;  %2587 = vmatmul.mubr.msk.f32.gmra.mrb[16].mxu1 %vm812_vm0, %v2328_v42  ;;  %v3365_v41 = vmul.u32.u64.low 3817748708, %v47_v35  ;;  %v3366_v42 = vmul.u32.u64.high 3817748708, %v47_v35, %v3365_v41 }
  0x2f   :  { %2540 = vmatprep.mubr.msk.f32.mxu0 %vm812_vm0, %v788_v43  ;;  %2589 = vmatprep.mubr.msk.f32.mxu1 %vm812_vm0, %v2329_v44  ;;  %v3369_v43 = vadd.s32 224, %v3332_v16  ;;  %v385_v44 = vsub.s32 %v71_v17, %v384_v36 }
  0x31   :  { %vm503_vm2 = vcmp.ne.s32.totalorder %v385_v44, 0  ;;  %vm539_vm3 = vcmp.lt.s32.totalorder %v385_v44, 0 }
  0x32   :  { %2541 = vmatmul.mubr.msk.f32.gmra.mrb[18].mxu0 %vm812_vm0, %v789_v45  ;;  %2590 = vmatmul.mubr.msk.f32.gmra.mrb[18].mxu1 %vm812_vm0, %v2330_v46  ;;  %v86_v45 = vshrl.u32 %v3350_v29, 4  ;;  %v374_v46 = vsub.s32 %v70_v18, %v373_v37  ;;  %vm3385_vm8 = vmand %vm539_vm3, %vm503_vm2 }
  0x33   :  { %2543 = vmatprep.mubr.msk.f32.mxu0 %vm812_vm0, %v790_v47  ;;  %2592 = vmatprep.mubr.msk.f32.mxu1 %vm812_vm0, %v2331_v48  ;;  %v405_v47 = vshrl.u32 %v3354_v32, 4  ;;  %v99_v48 = vsub.s32 %v45_v19, %v98_v40  ;;  %v4951_v40 = vmov 0.0  }
  0x34   :  { %vm502_vm4 = vcmp.ne.s32.totalorder %v374_v46, 0  ;;  %vm538_vm5 = vcmp.lt.s32.totalorder %v374_v46, 0 }
  0x35   :  { %vm477_vm6 = vcmp.ne.s32.totalorder %v99_v48, 0  ;;  %vm513_vm7 = vcmp.lt.s32.totalorder %v99_v48, 0  ;;  %vm3397_vm9 = vmand %vm538_vm5, %vm502_vm4 }
  0x36   :  { %2544 = vmatmul.mubr.msk.f32.gmra.mrb[20].mxu0 %vm812_vm0, %v791_v49  ;;  %2593 = vmatmul.mubr.msk.f32.gmra.mrb[20].mxu1 %vm812_vm0, %v2332_v50  ;;  %v3374_v49 = vmul.u32.u64.low 3817748708, %v3369_v43  ;;  %v3375_v50 = vmul.u32.u64.high 3817748708, %v3369_v43, %v3374_v49  ;;  %vm3402_vm10 = vmand %vm513_vm7, %vm477_vm6 }
  0x37   :  { %2546 = vmatprep.mubr.msk.f32.mxu0 %vm812_vm0, %v792_v51  ;;  %2595 = vmatprep.mubr.msk.f32.mxu1 %vm812_vm0, %v2333_v52  ;;  %v3378_v51 = vadd.s32 40, %v3332_v16  ;;  %v3381_v52 = vadd.s32 248, %v3332_v16  ;;  %v3506_v49 = vadd.s32 48, %v3332_v16 }
  0x3a   :  { %2547 = vmatmul.mubr.msk.f32.gmra.mrb[22].mxu0 %vm812_vm0, %v793_v53  ;;  %2596 = vmatmul.mubr.msk.f32.gmra.mrb[22].mxu1 %vm812_vm0, %v2334_v54  ;;  %v611_v53 = vadd.s32 18, %v385_v44  ;;  %v87_v54 = vmul.u32 18, %v86_v45 }
  0x3b   :  { %2549 = vmatprep.mubr.msk.f32.mxu0 %vm812_vm0, %v794_v55  ;;  %2598 = vmatprep.mubr.msk.f32.mxu1 %vm812_vm0, %v2335_v56  ;;  %v406_v55 = vmul.u32 18, %v405_v47  ;;  %v108_v56 = vshrl.u32 %v3363_v39, 4 }
  0x3e   :  { %2550 = vmatmul.mubr.msk.f32.gmra.mrb[24].mxu0 %vm812_vm0, %v795_v57  ;;  %2599 = vmatmul.mubr.msk.f32.gmra.mrb[24].mxu1 %vm812_vm0, %v2336_v58  ;;  %v610_v57 = vadd.s32 18, %v374_v46  ;;  %v119_v58 = vshrl.u32 %v3366_v42, 4 }
  0x3f   :  { %2601 = vmatprep.mubr.msk.f32.mxu1 %vm812_vm0, %v2337_v59 }
  0x42   :  { %2602 = vmatmul.mubr.msk.f32.gmra.mrb[26].mxu1 %vm812_vm0, %v2338_v60 }
  0x43   :  { %2604 = vmatprep.mubr.msk.f32.mxu1 %vm812_vm0, %v2339_v61  ;;  %v3390_v60 = vmul.u32.u64.low 3817748708, %v3378_v51  ;;  %v3391_v61 = vmul.u32.u64.high 3817748708, %v3378_v51, %v3390_v60 }
  0x45   :  { %v141_v22 = vshrl.u32 %v3391_v61, 4 }
  0x46   :  { %2605 = vmatmul.mubr.msk.f32.gmra.mrb[28].mxu1 %vm812_vm0, %v2340_v62 }
  0x47   :  { %2607 = vmatprep.mubr.msk.f32.mxu1 %vm812_vm0, %v2341_v63  ;;  %v3394_v62 = vmul.u32.u64.low 3817748708, %v3381_v52  ;;  %v3395_v63 = vmul.u32.u64.high 3817748708, %v3381_v52, %v3394_v62  ;;  %v142_v38 = vmul.u32 18, %v141_v22 }
  0x48   :  { %v1791_v62 = vld [vmem:[%s4938_s3] sm:$0xff] }
  0x49   :  { %v427_v23 = vshrl.u32 %v3395_v63, 4 }
  0x4a   :  { %2608 = vmatmul.mubr.msk.f32.gmra.mrb[30].mxu1 %vm812_vm0, %v2342_v0 }
  0x4b   :  { %2610 = vmatprep.mubr.msk.f32.mxu1 %vm812_vm0, %v2343_v1  ;;  %v585_v1 = vadd.s32 18, %v99_v48  ;;  %v428_v39 = vmul.u32 18, %v427_v23 }
  0x4e   :  { %2611 = vmatmul.mubr.msk.f32.gmra.mrb[32].mxu1 %vm812_vm0, %v2344_v2  ;;  %v88_v2 = vsub.s32 %v3332_v16, %v87_v54 }
  0x4f   :  { %2613 = vmatprep.mubr.msk.f32.mxu1 %vm812_vm0, %v2345_v3 }
  0x50   :  { %vm476_vm11 = vcmp.ne.s32.totalorder %v88_v2, 0  ;;  %vm512_vm12 = vcmp.lt.s32.totalorder %v88_v2, 0  ;;  %v584_v27 = vadd.s32 18, %v88_v2 }
  0x51   :  { %vm3459_vm2 = vmand %vm512_vm12, %vm476_vm11 }
  0x52   :  { %2614 = vmatmul.mubr.msk.f32.gmra.mrb[34].mxu1 %vm812_vm0, %v2346_v4  ;;  %v407_v4 = vsub.s32 %v73_v26, %v406_v55  ;;  %v3665_v55 = vadd.s32 272, %v3332_v16  ;;  %v3749_v26 = vadd.s32 96, %v3332_v16 }
  0x53   :  { %2616 = vmatprep.mubr.msk.f32.mxu1 %vm812_vm0, %v2347_v5  ;;  %v3407_v5 = vadd.s32 32, %v3332_v16 }
  0x54   :  { %vm505_vm13 = vcmp.ne.s32.totalorder %v407_v4, 0  ;;  %vm541_vm14 = vcmp.lt.s32.totalorder %v407_v4, 0  ;;  %v613_v34 = vadd.s32 18, %v407_v4 }
  0x55   :  { %v3426_v15 = vmul.u32.u64.low 3817748708, %v3407_v5  ;;  %v3427_v17 = vmul.u32.u64.high 3817748708, %v3407_v5, %v3426_v15  ;;  %vm3468_vm3 = vmand %vm541_vm14, %vm505_vm13 }
  0x56   :  { %2617 = vmatmul.mubr.msk.f32.gmra.mrb[36].mxu1 %vm812_vm0, %v2348_v6  ;;  %v120_v6 = vmul.u32 18, %v119_v58  ;;  %v649_v45 = vsel %vm3468_vm3, %v613_v34, %v407_v4  ;;  %v3521_v58 = vadd.s32 256, %v3332_v16 }
  0x57   :  { %2619 = vmatprep.mubr.msk.f32.mxu1 %vm812_vm0, %v2349_v7  ;;  %v394_v7 = vshrl.u32 %v3375_v50, 4  ;;  %v143_v50 = vsub.s32 %v3378_v51, %v142_v38  ;;  %vm3515_vm12 = vcmp.lt.s32.totalorder %v649_v45, 16 }
  0x58   :  { %v3429_v18 = vsub.s32 %v47_v35, %v120_v6 }
  0x59   :  { %v395_v19 = vmul.u32 18, %v394_v7  ;;  %v3546_v6 = vmul.u32.u64.low 3817748708, %v3521_v58  ;;  %v3547_v7 = vmul.u32.u64.high 3817748708, %v3521_v58, %v3546_v6 }
  0x5a   :  { %2620 = vmatmul.mubr.msk.f32.gmra.mrb[38].mxu1 %vm812_vm0, %v2350_v8  ;;  %v3411_v8 = vadd.s32 240, %v3332_v16  ;;  %vm479_vm4 = vcmp.ne.s32.totalorder %v3429_v18, 0  ;;  %vm515_vm5 = vcmp.lt.s32.totalorder %v3429_v18, 0  ;;  %v4949_v6 = vmov 0.0|0.0  }
  0x5b   :  { %2622 = vmatprep.mubr.msk.f32.mxu1 %vm812_vm0, %v2351_v9  ;;  %v647_v9 = vsel %vm3385_vm8, %v611_v53, %v385_v44  ;;  %v396_v37 = vsub.s32 %v3369_v43, %v395_v19  ;;  %v620_v43 = vsel %vm3459_vm2, %v584_v27, %v88_v2  ;;  %v587_v44 = vadd.s32 18, %v3429_v18  ;;  %vm3499_vm7 = vmand %vm515_vm5, %vm479_vm4  ;;  %2693 = vmatprep.subr.bf16.mxu0 %v4949_v6 }
  0x5c   :  { %v3432_v20 = vmul.u32.u64.low 3817748708, %v3411_v8  ;;  %v3433_v21 = vmul.u32.u64.high 3817748708, %v3411_v8, %v3432_v20  ;;  %vm3441_vm15 = vcmp.lt.s32.totalorder %v647_v9, 16  ;;  %v429_v53 = vsub.s32 %v3381_v52, %v428_v39  ;;  %2755 = vmatprep.subr.bf16.mxu1 %v4949_v6 }
  0x5d   :  { %vm3511_vm11 = vcmp.lt.s32.totalorder %v620_v43, 16  ;;  %v623_v51 = vsel %vm3499_vm7, %v587_v44, %v3429_v18  ;;  %v612_v60 = vadd.s32 18, %v396_v37  ;;  %v3543_v2 = vadd.s32 72, %v3332_v16 }
  0x5e   :  { %2623 = vmatmul.mubr.msk.f32.gmra.mrb[40].mxu1 %vm812_vm0, %v2352_v10  ;;  %v646_v10 = vsel %vm3397_vm9, %v610_v57, %v374_v46  ;;  %v130_v46 = vshrl.u32 %v3427_v17, 4  ;;  %vm504_vm9 = vcmp.ne.s32.totalorder %v396_v37, 0  ;;  %vm543_vm2 = vcmp.lt.s32.totalorder %v429_v53, 0 }
  0x5f   :  { %2625 = vmatprep.mubr.msk.f32.mxu1 %vm812_vm0, %v2353_v11  ;;  %v109_v11 = vmul.u32 18, %v108_v56  ;;  %v3560_v15 = vsel %vm3511_vm11, 1.0, %v4951_v40  ;;  %v3565_v17 = vsel %vm3515_vm12, 1.0, %v4951_v40  ;;  %v615_v19 = vadd.s32 18, %v429_v53 }
  0x60   :  { %v131_v61 = vmul.u32 18, %v130_v46  ;;  %4989 = vst [vmem:[#allocation10_spill] sm:$0xff] %v3565_v17  ;;  %v3583_v22 = vmul.u32.u64.low 3817748708, %v3543_v2  ;;  %v3584_v23 = vmul.u32.u64.high 3817748708, %v3543_v2, %v3583_v22  ;;  %vm3589_vm5 = vcmp.lt.s32.totalorder %v623_v51, 16 }
  0x61   :  { %v3464_v35 = vsub.s32 %v3357_v33, %v109_v11  ;;  %v3478_v33 = vsel %vm3441_vm15, 1.0, %v4951_v40  ;;  %vm481_vm15 = vcmp.ne.s32.totalorder %v143_v50, 0  ;;  %v589_v11 = vadd.s32 18, %v143_v50 }
  0x62   :  { %2626 = vmatmul.mubr.msk.f32.gmra.mrb[42].mxu1 %vm812_vm0, %v2354_v12  ;;  %v3418_v12 = vadd.s32 56, %v3332_v16  ;;  %v3678_v52 = vadd.s32 88, %v3332_v16 }
  0x63   :  { %2628 = vmatprep.mubr.msk.f32.mxu1 %vm812_vm0, %v2355_v13  ;;  %v621_v13 = vsel %vm3402_vm10, %v585_v1, %v99_v48  ;;  %vm478_vm6 = vcmp.ne.s32.totalorder %v3464_v35, 0  ;;  %vm514_vm8 = vcmp.lt.s32.totalorder %v3464_v35, 0  ;;  %v416_v48 = vshrl.u32 %v3433_v21, 4 }
  0x64   :  { %v3438_v24 = vmul.u32.u64.low 3817748708, %v3418_v12  ;;  %v3439_v25 = vmul.u32.u64.high 3817748708, %v3418_v12, %v3438_v24  ;;  %vm3453_vm1 = vcmp.lt.s32.totalorder %v621_v13, 16  ;;  %vm540_vm10 = vcmp.lt.s32.totalorder %v396_v37, 0  ;;  %vm3528_vm13 = vmand %vm514_vm8, %vm478_vm6 }
  0x65   :  { %v3488_v42 = vsel %vm3453_vm1, 1.0, %v4951_v40  ;;  %v586_v59 = vadd.s32 18, %v3464_v35  ;;  %vm3534_vm14 = vmand %vm540_vm10, %vm504_vm9  ;;  %v417_v63 = vmul.u32 18, %v416_v48  ;;  %vm507_vm1 = vcmp.ne.s32.totalorder %v429_v53, 0 }
  0x66   :  { %2629 = vmatmul.mubr.msk.f32.gmra.mrb[44].mxu1 %vm812_vm0, %v2356_v14  ;;  %v3423_v14 = vadd.s32 264, %v3332_v16  ;;  %vm3449_vm0 = vcmp.lt.s32.totalorder %v646_v10, 16  ;;  %v163_v54 = vshrl.u32 %v3439_v25, 4  ;;  %v648_v10 = vsel %vm3534_vm14, %v612_v60, %v396_v37  ;;  %vm3575_vm4 = vmand %vm543_vm2, %vm507_vm1 }
  0x67   :  { %v3483_v41 = vsel %vm3449_vm0, 1.0, %v4951_v40  ;;  %v3539_v0 = vmul.u32.u64.low 3817748708, %v3506_v49  ;;  %v3540_v1 = vmul.u32.u64.high 3817748708, %v3506_v49, %v3539_v0  ;;  %vm517_vm0 = vcmp.lt.s32.totalorder %v143_v50, 0 }
  0x68   :  { %v3446_v28 = vmul.u32.u64.low 3817748708, %v3423_v14  ;;  %v3447_v29 = vmul.u32.u64.high 3817748708, %v3423_v14, %v3446_v28  ;;  %v164_v3 = vmul.u32 18, %v163_v54  ;;  %v622_v9 = vsel %vm3528_vm13, %v586_v59, %v3464_v35  ;;  %vm3567_vm3 = vmand %vm517_vm0, %vm481_vm15 }
  0x69   :  { %v3555_v13 = vsub.s32 %v3407_v5, %v131_v61  ;;  %v3572_v20 = vsub.s32 %v3411_v8, %v417_v63  ;;  %v3587_v24 = vadd.s32 280, %v3332_v16  ;;  %vm3593_vm6 = vcmp.lt.s32.totalorder %v622_v9, 16  ;;  %v1792_v63 = vld [vmem:[%s4938_s3 + $0x8] sm:$0xff]  ;;  %v1794_v5 = vld [vmem:[%s4938_s3 + $0x18] sm:$0xff] }
  0x6a   :  { %v449_v57 = vshrl.u32 %v3447_v29, 4  ;;  %v3580_v21 = vsub.s32 %v3418_v12, %v164_v3  ;;  %vm3597_vm7 = vcmp.lt.s32.totalorder %v648_v10, 16  ;;  %v625_v27 = vsel %vm3567_vm3, %v589_v11, %v143_v50 }
  0x6b   :  { %vm480_vm8 = vcmp.ne.s32.totalorder %v3555_v13, 0  ;;  %vm516_vm9 = vcmp.lt.s32.totalorder %v3555_v13, 0  ;;  %v3609_v28 = vadd.s32 64, %v3332_v16  ;;  %v651_v29 = vsel %vm3575_vm4, %v615_v19, %v429_v53  ;;  %v1800_v53 = vld [vmem:[%s4938_s3 + $0x48] sm:$0xff] }
  0x6c   :  { %v450_v4 = vmul.u32 18, %v449_v57  ;;  %vm506_vm10 = vcmp.ne.s32.totalorder %v3572_v20, 0  ;;  %vm542_vm11 = vcmp.lt.s32.totalorder %v3572_v20, 0  ;;  %vm483_vm12 = vcmp.ne.s32.totalorder %v3580_v21, 0  ;;  %vm3626_vm15 = vmand %vm516_vm9, %vm480_vm8 }
  0x6d   :  { %vm519_vm13 = vcmp.lt.s32.totalorder %v3580_v21, 0  ;;  %v3619_v30 = vmul.u32.u64.low 3817748708, %v3587_v24  ;;  %v3620_v31 = vmul.u32.u64.high 3817748708, %v3587_v24, %v3619_v30  ;;  %vm3622_vm14 = vcmp.lt.s32.totalorder %v625_v27, 16  ;;  %vm3634_vm2 = vmand %vm542_vm11, %vm506_vm10 }
  0x6e   :  { %v3602_v12 = vsub.s32 %v3423_v14, %v450_v4  ;;  %v152_v14 = vshrl.u32 %v3540_v1, 4  ;;  %v438_v35 = vshrl.u32 %v3547_v7, 4  ;;  %v588_v36 = vadd.s32 18, %v3555_v13  ;;  %vm3643_vm4 = vmand %vm519_vm13, %vm483_vm12 }
  0x6f   :  { %v614_v38 = vadd.s32 18, %v3572_v20  ;;  %v3640_v39 = vmul.u32.u64.low 3817748708, %v3609_v28  ;;  %v3641_v43 = vmul.u32.u64.high 3817748708, %v3609_v28, %v3640_v39  ;;  %vm687_vm3 = vcmp.lt.s32.totalorder %v651_v29, 16 }
  0x70   :  { %vm509_vm0 = vcmp.ne.s32.totalorder %v3602_v12, 0  ;;  %vm545_vm1 = vcmp.lt.s32.totalorder %v3602_v12, 0  ;;  %v591_v45 = vadd.s32 18, %v3580_v21  ;;  %v617_v46 = vadd.s32 18, %v3602_v12 }
  0x71   :  { %v153_v47 = vmul.u32 18, %v152_v14  ;;  %v3652_v48 = vsel %vm3589_vm5, 1.0, %v4951_v40  ;;  %v3657_v50 = vsel %vm3593_vm6, 1.0, %v4951_v40  ;;  %vm3659_vm8 = vmand %vm545_vm1, %vm509_vm0  ;;  %v185_v54 = vshrl.u32 %v3584_v23, 4 }
  0x72   :  { %v3670_v56 = vsel %vm3597_vm7, 1.0, %v4951_v40  ;;  %v3675_v57 = vsel %vm3622_vm14, 1.0, %v4951_v40  ;;  %v439_v51 = vmul.u32 18, %v438_v35  ;;  %v3681_v59 = vsel %vm687_vm3, 1.0, %v4951_v40  ;;  %v1795_v35 = vld [vmem:[%s4938_s3 + $0x20] sm:$0xff] }
  0x73   :  { %5010 = vst [vmem:[#allocation11_spill] sm:$0xff] %v3670_v56  ;;  %5011 = vst [vmem:[#allocation12_spill] sm:$0xff] %v3681_v59  ;;  %v624_v60 = vsel %vm3626_vm15, %v588_v36, %v3555_v13  ;;  %v650_v61 = vsel %vm3634_vm2, %v614_v38, %v3572_v20  ;;  %v627_v0 = vsel %vm3643_vm4, %v591_v45, %v3580_v21  ;;  %v3705_v4 = vadd.s32 80, %v3332_v16  ;;  %v1793_v20 = vld [vmem:[%s4938_s3 + $0x10] sm:$0xff]  ;;  %v1796_v36 = vld [vmem:[%s4938_s3 + $0x28] sm:$0xff] }
  0x74   :  { %v653_v1 = vsel %vm3659_vm8, %v617_v46, %v3602_v12  ;;  %v3702_v3 = vsub.s32 %v3506_v49, %v153_v47  ;;  %v186_v7 = vmul.u32 18, %v185_v54  ;;  %v471_v9 = vshrl.u32 %v3620_v31, 4 }
  0x75   :  { %v3711_v10 = vmul.u32.u64.low 3817748708, %v3665_v55  ;;  %v3712_v11 = vmul.u32.u64.high 3817748708, %v3665_v55, %v3711_v10  ;;  %v3715_v13 = vsub.s32 %v3521_v58, %v439_v51  ;;  %v2694_v19 = vpack.c.bf16 %v1792_v63, %v1791_v62 }
  0x76   :  { %v3718_v49 = vmul.u32.u64.low 3817748708, %v3678_v52  ;;  %v3719_v18 = vmul.u32.u64.high 3817748708, %v3678_v52, %v3718_v49  ;;  %vm3727_vm5 = vcmp.lt.s32.totalorder %v624_v60, 16  ;;  %vm3731_vm6 = vcmp.lt.s32.totalorder %v650_v61, 16 }
  0x77   :  { %v174_v22 = vshrl.u32 %v3641_v43, 4  ;;  %v3737_v23 = vadd.s32 104, %v3332_v16  ;;  %vm3739_vm7 = vcmp.lt.s32.totalorder %v627_v0, 16  ;;  %vm3743_vm9 = vcmp.lt.s32.totalorder %v653_v1, 16  ;;  %2695 = vmatpush3.bf16.msra.mxu0 %v2694_v19  ;;  %v1797_v0 = vld [vmem:[%s4938_s3 + $0x30] sm:$0xff]  ;;  %v1798_v1 = vld [vmem:[%s4938_s3 + $0x38] sm:$0xff] }
  0x78   :  { %vm482_vm10 = vcmp.ne.s32.totalorder %v3702_v3, 0  ;;  %v3752_v12 = vsub.s32 %v3543_v2, %v186_v7  ;;  %v3755_v27 = vmul.u32.u64.low 3817748708, %v3705_v4  ;;  %v3756_v29 = vmul.u32.u64.high 3817748708, %v3705_v4, %v3755_v27  ;;  %2696 = vmatprep.subr.bf16.mxu0 %v4949_v6 }
  0x79   :  { %v2697_v14 = vpack.c.bf16 %v1794_v5, %v1793_v20  ;;  %vm518_vm11 = vcmp.lt.s32.totalorder %v3702_v3, 0  ;;  %v590_v30 = vadd.s32 18, %v3702_v3  ;;  %vm508_vm12 = vcmp.ne.s32.totalorder %v3715_v13, 0 }
  0x7a   :  { %v472_v31 = vmul.u32 18, %v471_v9  ;;  %vm544_vm13 = vcmp.lt.s32.totalorder %v3715_v13, 0  ;;  %v175_v32 = vmul.u32 18, %v174_v22  ;;  %v3778_v39 = vadd.s32 120, %v3332_v16  ;;  %vm3782_vm14 = vmand %vm518_vm11, %vm482_vm10 }
  0x7b   :  { %v3764_v2 = vmul.u32.u64.low 3817748708, %v3737_v23  ;;  %v3765_v34 = vmul.u32.u64.high 3817748708, %v3737_v23, %v3764_v2  ;;  %v3774_v37 = vmul.u32.u64.low 3817748708, %v3749_v26  ;;  %v3775_v38 = vmul.u32.u64.high 3817748708, %v3749_v26, %v3774_v37  ;;  %2698 = vmatpush3.bf16.msra.mxu0 %v2697_v14  ;;  %vm3800_vm1 = vmand %vm544_vm13, %vm508_vm12 }
  0x7c   :  { %v2700_v43 = vpack.c.bf16 %v1796_v36, %v1795_v35  ;;  %v616_v45 = vadd.s32 18, %v3715_v13  ;;  %vm485_vm15 = vcmp.ne.s32.totalorder %v3752_v12, 0  ;;  %vm521_vm0 = vcmp.lt.s32.totalorder %v3752_v12, 0  ;;  %2699 = vmatprep.subr.bf16.mxu0 %v4949_v6  ;;  %v1803_v35 = vld [vmem:[%s4938_s3 + $0x60] sm:$0xff] }
  0x7d   :  { %v460_v46 = vshrl.u32 %v3712_v11, 4  ;;  %v3794_v47 = vsel %vm3727_vm5, 1.0, %v4951_v40  ;;  %v3805_v54 = vsub.s32 %v3587_v24, %v472_v31  ;;  %v207_v51 = vshrl.u32 %v3719_v18, 4  ;;  %vm3837_vm2 = vmand %vm521_vm0, %vm485_vm15 }
  0x7e   :  { %v3809_v60 = vadd.s32 112, %v3332_v16  ;;  %v3814_v61 = vsel %vm3731_vm6, 1.0, %v4951_v40  ;;  %v3819_v62 = vsel %vm3739_vm7, 1.0, %v4951_v40  ;;  %v3824_v24 = vsel %vm3743_vm9, 1.0, %v4951_v40 }
  0x7f   :  { %5024 = vst [vmem:[#allocation13_spill] sm:$0xff] %v3814_v61  ;;  %5025 = vst [vmem:[#allocation14_spill] sm:$0xff] %v3824_v24  ;;  %v593_v63 = vadd.s32 18, %v3752_v12  ;;  %v3842_v9 = vsub.s32 %v3609_v28, %v175_v32  ;;  %v3845_v10 = vmul.u32.u64.low 3817748708, %v3778_v39  ;;  %v3846_v11 = vmul.u32.u64.high 3817748708, %v3778_v39, %v3845_v10  ;;  %2701 = vmatpush3.bf16.msra.mxu0 %v2700_v43 }
  0x80   :  { %v2703_v49 = vpack.c.bf16 %v1798_v1, %v1797_v0  ;;  %v626_v18 = vsel %vm3782_vm14, %v590_v30, %v3702_v3  ;;  %v652_v19 = vsel %vm3800_vm1, %v616_v45, %v3715_v13  ;;  %v461_v20 = vmul.u32 18, %v460_v46  ;;  %2702 = vmatprep.subr.bf16.mxu0 %v4949_v6  ;;  %v1799_v46 = vld [vmem:[%s4938_s3 + $0x40] sm:$0xff] }
  0x81   :  { %v196_v5 = vshrl.u32 %v3756_v29, 4  ;;  %vm511_vm3 = vcmp.ne.s32.totalorder %v3805_v54, 0  ;;  %v208_v28 = vmul.u32 18, %v207_v51  ;;  %v629_v3 = vsel %vm3837_vm2, %v593_v63, %v3752_v12 }
  0x82   :  { %v3858_v21 = vmul.u32.u64.low 3817748708, %v3809_v60  ;;  %v3859_v58 = vmul.u32.u64.high 3817748708, %v3809_v60, %v3858_v21  ;;  %vm547_vm4 = vcmp.lt.s32.totalorder %v3805_v54, 0  ;;  %v229_v13 = vshrl.u32 %v3765_v34, 4 }
  0x83   :  { %v3867_v22 = vadd.s32 136, %v3332_v16  ;;  %vm484_vm8 = vcmp.ne.s32.totalorder %v3842_v9, 0  ;;  %vm520_vm5 = vcmp.lt.s32.totalorder %v3842_v9, 0  ;;  %v218_v25 = vshrl.u32 %v3775_v38, 4  ;;  %2704 = vmatpush3.bf16.msra.mxu0 %v2703_v49  ;;  %vm3895_vm10 = vmand %vm547_vm4, %vm511_vm3 }
  0x84   :  { %v3873_v8 = vadd.s32 128, %v3332_v16  ;;  %vm3875_vm6 = vcmp.lt.s32.totalorder %v626_v18, 16  ;;  %vm3879_vm7 = vcmp.lt.s32.totalorder %v652_v19, 16  ;;  %v3884_v29 = vadd.s32 18, %v3805_v54  ;;  %2705 = vmatprep.subr.bf16.mxu0 %v4949_v6  ;;  %vm3912_vm11 = vmand %vm520_vm5, %vm484_vm8 }
  0x85   :  { %v197_v14 = vmul.u32 18, %v196_v5  ;;  %vm3887_vm9 = vcmp.lt.s32.totalorder %v629_v3, 16  ;;  %v3900_v32 = vadd.s32 18, %v3842_v9  ;;  %v3903_v2 = vsub.s32 %v3665_v55, %v461_v20 }
  0x86   :  { %v3906_v34 = vsub.s32 %v3678_v52, %v208_v28  ;;  %v230_v36 = vmul.u32 18, %v229_v13  ;;  %v3917_v37 = vmul.u32.u64.low 3817748708, %v3867_v22  ;;  %v3918_v38 = vmul.u32.u64.high 3817748708, %v3867_v22, %v3917_v37  ;;  %v1802_v28 = vld [vmem:[%s4938_s3 + $0x58] sm:$0xff] }
  0x87   :  { %5036 = vst [vmem:[#allocation15_spill] sm:$0xff] %v3903_v2  ;;  %v3921_v43 = vadd.s32 152, %v3332_v16  ;;  %v219_v55 = vmul.u32 18, %v218_v25  ;;  %v251_v52 = vshrl.u32 %v3846_v11, 4  ;;  %v3937_v51 = vsel %vm3875_vm6, 1.0, %v4951_v40 }
  0x88   :  { %v3925_v44 = vmul.u32.u64.low 3817748708, %v3873_v8  ;;  %v3926_v45 = vmul.u32.u64.high 3817748708, %v3873_v8, %v3925_v44  ;;  %v3942_v63 = vsel %vm3879_vm7, 1.0, %v4951_v40  ;;  %v3945_v0 = vsub.s32 %v3705_v4, %v197_v14 }
  0x89   :  { %5039 = vst [vmem:[#allocation16_spill] sm:$0xff] %v3942_v63  ;;  %v2706_v1 = vpack.c.bf16 %v1800_v53, %v1799_v46  ;;  %v3950_v7 = vsel %vm3887_vm9, 1.0, %v4951_v40  ;;  %v628_v11 = vsel %vm3912_vm11, %v3900_v32, %v3842_v9  ;;  %v240_v49 = vshrl.u32 %v3859_v58, 4  ;;  %v1806_v44 = vld [vmem:[%s4938_s3 + $0x78] sm:$0xff] }
  0x8a   :  { %vm510_vm12 = vcmp.ne.s32.totalorder %v3903_v2, 0  ;;  %vm546_vm13 = vcmp.lt.s32.totalorder %v3903_v2, 0  ;;  %v3964_v4 = vadd.s32 18, %v3903_v2  ;;  %v3967_v18 = vsub.s32 %v3737_v23, %v230_v36  ;;  %v1801_v23 = vld [vmem:[%s4938_s3 + $0x50] sm:$0xff]  ;;  %v1804_v36 = vld [vmem:[%s4938_s3 + $0x68] sm:$0xff] }
  0x8b   :  { %v3970_v19 = vmul.u32.u64.low 3817748708, %v3921_v43  ;;  %v3971_v20 = vmul.u32.u64.high 3817748708, %v3921_v43, %v3970_v19  ;;  %2707 = vmatpush3.bf16.msra.mxu0 %v2706_v1  ;;  %vm487_vm14 = vcmp.ne.s32.totalorder %v3906_v34, 0  ;;  %vm523_vm15 = vcmp.lt.s32.totalorder %v3906_v34, 0 }
  0x8c   :  { %v3976_v9 = vsub.s32 %v3749_v26, %v219_v55  ;;  %v252_v5 = vmul.u32 18, %v251_v52  ;;  %2708 = vmatprep.subr.bf16.mxu0 %v4949_v6  ;;  %v3986_v21 = vadd.s32 18, %v3906_v34  ;;  %vm486_vm0 = vcmp.ne.s32.totalorder %v3945_v0, 0  ;;  %vm4022_vm8 = vmand %vm523_vm15, %vm487_vm14  ;;  %v1805_v52 = vld [vmem:[%s4938_s3 + $0x70] sm:$0xff] }
  0x8d   :  { %v3990_v58 = vadd.s32 144, %v3332_v16  ;;  %v2709_v26 = vpack.c.bf16 %v1802_v28, %v1801_v23  ;;  %vm522_vm1 = vcmp.lt.s32.totalorder %v3945_v0, 0  ;;  %v3994_v3 = vadd.s32 18, %v3945_v0 }
  0x8e   :  { %v241_v13 = vmul.u32 18, %v240_v49  ;;  %v3997_v25 = vadd.s32 168, %v3332_v16  ;;  %vm489_vm2 = vcmp.ne.s32.totalorder %v3967_v18, 0  ;;  %vm525_vm3 = vcmp.lt.s32.totalorder %v3967_v18, 0  ;;  %vm4040_vm5 = vmand %vm522_vm1, %vm486_vm0 }
  0x8f   :  { %v597_v27 = vadd.s32 18, %v3967_v18  ;;  %v273_v12 = vshrl.u32 %v3918_v38, 4  ;;  %2710 = vmatpush3.bf16.msra.mxu0 %v2709_v26  ;;  %vm488_vm4 = vcmp.ne.s32.totalorder %v3976_v9, 0  ;;  %v4005_v14 = vsub.s32 %v3778_v39, %v252_v5  ;;  %vm4058_vm9 = vmand %vm525_vm3, %vm489_vm2 }
  0x90   :  { %v262_v30 = vshrl.u32 %v3926_v45, 4  ;;  %v4009_v32 = vadd.s32 160, %v3332_v16  ;;  %2711 = vmatprep.subr.bf16.mxu0 %v4949_v6  ;;  %v4027_v37 = vmul.u32.u64.low 3817748708, %v3990_v58  ;;  %v4028_v38 = vmul.u32.u64.high 3817748708, %v3990_v58, %v4027_v37  ;;  %vm4094_vm1 = vmand %vm546_vm13, %vm510_vm12 }
  0x91   :  { %v2712_v55 = vpack.c.bf16 %v1804_v36, %v1803_v35  ;;  %vm524_vm6 = vcmp.lt.s32.totalorder %v3976_v9, 0  ;;  %v4046_v46 = vsub.s32 %v3809_v60, %v241_v13  ;;  %vm2949_vm7 = vmmov 0  }
  0x92   :  { %v4049_v53 = vmul.u32.u64.low 3817748708, %v3997_v25  ;;  %v4050_v1 = vmul.u32.u64.high 3817748708, %v3997_v25, %v4049_v53  ;;  %2663 = vmatprep.mubr.msk.f32.mxu0 %vm2949_vm7, %v4951_v40  ;;  %v274_v19 = vmul.u32 18, %v273_v12  ;;  %v295_v60 = vshrl.u32 %v3971_v20, 4  ;;  %vm4081_vm15 = vmand %vm524_vm6, %vm488_vm4 }
  0x93   :  { %v4064_v5 = vadd.s32 184, %v3332_v16  ;;  %2713 = vmatpush3.bf16.msra.mxu0 %v2712_v55  ;;  %v2715_v23 = vpack.c.bf16 %v1806_v44, %v1805_v52  ;;  %vm4066_vm11 = vcmp.lt.s32.totalorder %v628_v11, 16  ;;  %v631_v26 = vsel %vm4022_vm8, %v3986_v21, %v3906_v34 }
  0x94   :  { %v596_v13 = vadd.s32 18, %v3976_v9  ;;  %vm491_vm14 = vcmp.ne.s32.totalorder %v4005_v14, 0  ;;  %2714 = vmatprep.subr.bf16.mxu0 %v4949_v6  ;;  %vm527_vm0 = vcmp.lt.s32.totalorder %v4005_v14, 0  ;;  %v263_v20 = vmul.u32 18, %v262_v30 }
  0x95   :  { %v4087_v12 = vmul.u32.u64.low 3817748708, %v4009_v32  ;;  %v4088_v34 = vmul.u32.u64.high 3817748708, %v4009_v32, %v4087_v12  ;;  %v630_v35 = vsel %vm4040_vm5, %v3994_v3, %v3945_v0  ;;  %v633_v30 = vsel %vm4058_vm9, %v597_v27, %v3967_v18  ;;  %vm4124_vm12 = vmand %vm527_vm0, %vm491_vm14 }
  0x96   :  { %vm490_vm2 = vcmp.ne.s32.totalorder %v4046_v46, 0  ;;  %vm526_vm3 = vcmp.lt.s32.totalorder %v4046_v46, 0  ;;  %v275_v36 = vsub.s32 %v3867_v22, %v274_v19  ;;  %v296_v39 = vmul.u32 18, %v295_v60  ;;  %v4270_v12 = vld [vmem:[%s4937_s2] ss:$0 sm:$0xff] }
  0x97   :  { %v4109_v37 = vmul.u32.u64.low 3817748708, %v4064_v5  ;;  %v4110_v55 = vmul.u32.u64.high 3817748708, %v4064_v5, %v4109_v37  ;;  %2716 = vmatpush3.bf16.msra.mxu0 %v2715_v23  ;;  %v4115_v0 = vsel %vm4066_vm11, 1.0, %v4951_v40  ;;  %v632_v18 = vsel %vm4081_vm15, %v596_v13, %v3976_v9  ;;  %vm4141_vm4 = vmand %vm526_vm3, %vm490_vm2 }
  0x98   :  { %v599_v3 = vadd.s32 18, %v4005_v14  ;;  %v598_v27 = vadd.s32 18, %v4046_v46  ;;  %2717 = vmatprep.subr.bf16.mxu0 %v4949_v6  ;;  %vm4135_vm13 = vcmp.lt.s32.totalorder %v631_v26, 16  ;;  %v4146_v45 = vsub.s32 %v3873_v8, %v263_v20 }
  0x99   :  { %v284_v53 = vshrl.u32 %v4028_v38, 4  ;;  %vm4149_vm8 = vcmp.lt.s32.totalorder %v630_v35, 16  ;;  %vm4153_vm5 = vcmp.lt.s32.totalorder %v633_v30, 16  ;;  %v317_v60 = vshrl.u32 %v4050_v1, 4 }
  0x9a   :  { %v4159_v23 = vadd.s32 176, %v3332_v16  ;;  %vm4161_vm6 = vcmp.lt.s32.totalorder %v632_v18, 16  ;;  %vm493_vm9 = vcmp.ne.s32.totalorder %v275_v36, 0  ;;  %vm529_vm11 = vcmp.lt.s32.totalorder %v275_v36, 0 }
  0x9b   :  { %v4166_v8 = vsub.s32 %v3921_v43, %v296_v39  ;;  %v635_v38 = vsel %vm4124_vm12, %v599_v3, %v4005_v14  ;;  %v634_v1 = vsel %vm4141_vm4, %v598_v27, %v4046_v46  ;;  %v601_v26 = vadd.s32 18, %v275_v36  ;;  %vm4182_vm15 = vmand %vm529_vm11, %vm493_vm9 }
  0x9c   :  { %v4175_v13 = vadd.s32 200, %v3332_v16  ;;  %vm492_vm14 = vcmp.ne.s32.totalorder %v4146_v45, 0  ;;  %v285_v11 = vmul.u32 18, %v284_v53  ;;  %v306_v20 = vshrl.u32 %v4088_v34, 4 }
  0x9d   :  { %v4180_v43 = vadd.s32 192, %v3332_v16  ;;  %vm528_vm0 = vcmp.lt.s32.totalorder %v4146_v45, 0  ;;  %v318_v14 = vmul.u32 18, %v317_v60  ;;  %vm4191_vm2 = vcmp.lt.s32.totalorder %v635_v38, 16 }
  0x9e   :  { %v4188_v46 = vmul.u32.u64.low 3817748708, %v4159_v23  ;;  %v4189_v35 = vmul.u32.u64.high 3817748708, %v4159_v23, %v4188_v46  ;;  %vm495_vm3 = vcmp.ne.s32.totalorder %v4166_v8, 0  ;;  %vm531_vm12 = vcmp.lt.s32.totalorder %v4166_v8, 0  ;;  %vm4211_vm9 = vmand %vm528_vm0, %vm492_vm14 }
  0x9f   :  { %v339_v34 = vshrl.u32 %v4110_v55, 4  ;;  %vm4198_vm4 = vcmp.lt.s32.totalorder %v634_v1, 16  ;;  %v600_v37 = vadd.s32 18, %v4146_v45  ;;  %v637_v3 = vsel %vm4182_vm15, %v601_v26, %v275_v36  ;;  %vm4224_vm11 = vmand %vm531_vm12, %vm495_vm3 }
  0xa0   :  { %v4204_v18 = vmul.u32.u64.low 3817748708, %v4175_v13  ;;  %v4205_v22 = vmul.u32.u64.high 3817748708, %v4175_v13, %v4204_v18  ;;  %v603_v55 = vadd.s32 18, %v4166_v8  ;;  %v4217_v44 = vsub.s32 %v3990_v58, %v285_v11 }
  0xa1   :  { %v307_v53 = vmul.u32 18, %v306_v20  ;;  %v4222_v60 = vsel %vm4135_vm13, 1.0, %v4951_v40  ;;  %v4229_v36 = vsub.s32 %v3997_v25, %v318_v14  ;;  %v4238_v58 = vsel %vm4149_vm8, 1.0, %v4951_v40 }
  0xa2   :  { %v4232_v1 = vmul.u32.u64.low 3817748708, %v4180_v43  ;;  %v4233_v26 = vmul.u32.u64.high 3817748708, %v4180_v43, %v4232_v1  ;;  %v4243_v9 = vsel %vm4153_vm5, 1.0, %v4951_v40  ;;  %v4248_v11 = vsel %vm4161_vm6, 1.0, %v4951_v40 }
  0xa3   :  { %v340_v25 = vmul.u32 18, %v339_v34  ;;  %v4253_v20 = vsel %vm4191_vm2, 1.0, %v4951_v40  ;;  %v4258_v49 = vsel %vm4198_vm4, 1.0, %v4951_v40  ;;  %vm4260_vm13 = vcmp.lt.s32.totalorder %v637_v3, 16 }
  0xa4   :  { %v636_v28 = vsel %vm4211_vm9, %v600_v37, %v4146_v45  ;;  %v639_v30 = vsel %vm4224_vm11, %v603_v55, %v4166_v8  ;;  %vm494_vm8 = vcmp.ne.s32.totalorder %v4217_v44, 0  ;;  %vm530_vm5 = vcmp.lt.s32.totalorder %v4217_v44, 0 }
  0xa5   :  { %v4280_v34 = vsub.s32 %v4009_v32, %v307_v53  ;;  %vm497_vm6 = vcmp.ne.s32.totalorder %v4229_v36, 0  ;;  %vm533_vm14 = vcmp.lt.s32.totalorder %v4229_v36, 0  ;;  %v328_v18 = vshrl.u32 %v4189_v35, 4  ;;  %vm4303_vm0 = vmand %vm530_vm5, %vm494_vm8 }
  0xa6   :  { %v4292_v3 = vsel %vm4260_vm13, 1.0, %v4951_v40  ;;  %vm4294_vm15 = vcmp.lt.s32.totalorder %v636_v28, 16  ;;  %v4299_v27 = vsub.s32 %v4064_v5, %v340_v25  ;;  %v602_v35 = vadd.s32 18, %v4217_v44  ;;  %vm4320_vm3 = vmand %vm533_vm14, %vm497_vm6 }
  0xa7   :  { %v605_v38 = vadd.s32 18, %v4229_v36  ;;  %v361_v1 = vshrl.u32 %v4205_v22, 4  ;;  %vm4312_vm2 = vcmp.lt.s32.totalorder %v639_v30, 16  ;;  %vm496_vm12 = vcmp.ne.s32.totalorder %v4280_v34, 0 }
  0xa8   :  { %vm532_vm4 = vcmp.lt.s32.totalorder %v4280_v34, 0  ;;  %v350_v6 = vshrl.u32 %v4233_v26, 4  ;;  %vm499_vm9 = vcmp.ne.s32.totalorder %v4299_v27, 0  ;;  %vm535_vm11 = vcmp.lt.s32.totalorder %v4299_v27, 0 }
  0xa9   :  { %vm4347_vm13 = vmand %vm532_vm4, %vm496_vm12  ;;  %v607_v53 = vadd.s32 18, %v4299_v27 }
  0xaa   :  { %vm4365_vm8 = vmand %vm535_vm11, %vm499_vm9 }
  0xe1   :  { %v4272_v14 = vpop.f32.mrb[0].mxu1  ;;  %v2515_v46 = vpop.f32.mrb[0].mxu0 }
  0xe2   :  { %v4282_v45 = vpop.f32.mrb[1].mxu1  ;;  %v997_v39 = vadd.f32 %v2515_v46, %v4270_v12  ;;  %v991_v37 = vpop.f32.mrb[1].mxu0 }
  0xe3   :  { %v992_v8 = vadd.f32 %v4270_v12, %v991_v37 }
  0xe4   :  { %v1171_v55 = vmax.f32 %v997_v39, 0.0 }
  0xe5   :  { %v1170_v19 = vmax.f32 %v992_v8, 0.0  ;;  %v2518_v28 = vpop.f32.mrb[2].mxu0  ;;  %v4310_v46 = vpop.f32.mrb[2].mxu1  ;;  %v329_v8 = vmul.u32 18, %v328_v18  ;;  %v362_v18 = vmul.u32 18, %v361_v1 }
  0xe6   :  { %v1207_v22 = vmul.f32 %v3488_v42, %v1171_v55  ;;  %v1007_v39 = vadd.f32 %v2518_v28, %v4270_v12  ;;  %v1001_v30 = vpop.f32.mrb[3].mxu0  ;;  %v4328_v37 = vpop.f32.mrb[3].mxu1  ;;  %v638_v55 = vsel %vm4303_vm0, %v602_v35, %v4217_v44  ;;  %v641_v28 = vsel %vm4320_vm3, %v605_v38, %v4229_v36 }
  0xe7   :  { %v1206_v52 = vmul.f32 %v3560_v15, %v1170_v19  ;;  %v1002_v10 = vadd.f32 %v4270_v12, %v1001_v30  ;;  %v604_v44 = vadd.s32 18, %v4280_v34  ;;  %v4370_v25 = vsub.s32 %v4159_v23, %v329_v8 }
  0xe8   :  { %v1173_v40 = vmax.f32 %v1007_v39, 0.0  ;;  %vm4380_vm5 = vcmp.lt.s32.totalorder %v638_v55, 16  ;;  %vm4384_vm6 = vcmp.lt.s32.totalorder %v641_v28, 16  ;;  %v643_v55 = vsel %vm4365_vm8, %v607_v53, %v4299_v27 }
  0xe9   :  { %v1242_v16 = vadd.f32 %v1207_v22, %v1206_v52  ;;  %v1172_v26 = vmax.f32 %v1002_v10, 0.0  ;;  %v2521_v63 = vpop.f32.mrb[4].mxu0  ;;  %v4341_v19 = vpop.f32.mrb[4].mxu1  ;;  %v5086_v10 = vmov 0.0   ;;  %v640_v5 = vsel %vm4347_vm13, %v604_v44, %v4280_v34 }
  0xea   :  { %v1017_v36 = vadd.f32 %v2521_v63, %v4270_v12  ;;  %v1011_v35 = vpop.f32.mrb[5].mxu0  ;;  %v4354_v52 = vpop.f32.mrb[5].mxu1  ;;  %v4359_v38 = vsel %vm4294_vm15, 1.0, %v5086_v10  ;;  %v351_v63 = vmul.u32 18, %v350_v6  ;;  %v1209_v22 = vmul.f32 %v3652_v48, %v1173_v40 }
  0xeb   :  { %v1208_v30 = vmul.f32 %v3657_v50, %v1172_v26  ;;  %v1012_v32 = vadd.f32 %v4270_v12, %v1011_v35  ;;  %v4378_v24 = vsel %vm4312_vm2, 1.0, %v5086_v10  ;;  %v4389_v40 = vsub.s32 %v4175_v13, %v362_v18 }
  0xec   :  { %v1175_v61 = vmax.f32 %v1017_v36, 0.0  ;;  %vm498_vm14 = vcmp.ne.s32.totalorder %v4370_v25, 0  ;;  %vm534_vm15 = vcmp.lt.s32.totalorder %v4370_v25, 0  ;;  %vm4410_vm0 = vcmp.lt.s32.totalorder %v640_v5, 16 }
  0xed   :  { %v1243_v6 = vadd.f32 %v1242_v16, %v1208_v30  ;;  %v1174_v8 = vmax.f32 %v1012_v32, 0.0  ;;  %v2524_v26 = vpop.f32.mrb[6].mxu0  ;;  %v4391_v35 = vpop.f32.mrb[6].mxu1  ;;  %v4405_v16 = vsub.s32 %v4180_v43, %v351_v63  ;;  %vm501_vm2 = vcmp.ne.s32.totalorder %v4389_v40, 0  ;;  %vm4430_vm4 = vmand %vm534_vm15, %vm498_vm14 }
  0xee   :  { %5093 = vst [vmem:[#allocation17_spill] sm:$0xff] %v4391_v35  ;;  %v1027_v28 = vadd.f32 %v2524_v26, %v4270_v12  ;;  %v1021_v36 = vpop.f32.mrb[7].mxu0  ;;  %v4400_v17 = vpop.f32.mrb[7].mxu1  ;;  %v1211_v13 = vmul.f32 %v3675_v57, %v1175_v61  ;;  %vm537_vm3 = vcmp.lt.s32.totalorder %v4389_v40, 0  ;;  %vm4418_vm12 = vcmp.lt.s32.totalorder %v643_v55, 16 }
  0xef   :  { %5094 = vst [vmem:[#allocation18_spill] sm:$0xff] %v4400_v17  ;;  %v1210_v34 = vmul.f32 %v3794_v47, %v1174_v8  ;;  %v1244_v18 = vadd.f32 %v1243_v6, %v1209_v22  ;;  %v1022_v39 = vadd.f32 %v4270_v12, %v1021_v36  ;;  %v606_v22 = vadd.s32 18, %v4370_v25  ;;  %vm4444_vm13 = vmand %vm537_vm3, %vm501_vm2 }
  0xf0   :  { %v1177_v27 = vmax.f32 %v1027_v28, 0.0  ;;  %v609_v26 = vadd.s32 18, %v4389_v40  ;;  %vm500_vm9 = vcmp.ne.s32.totalorder %v4405_v16, 0  ;;  %vm536_vm11 = vcmp.lt.s32.totalorder %v4405_v16, 0 }
  0xf1   :  { %v1245_v53 = vadd.f32 %v1244_v18, %v1210_v34  ;;  %v1176_v1 = vmax.f32 %v1022_v39, 0.0  ;;  %v2527_v43 = vpop.f32.mrb[8].mxu0  ;;  %v4416_v63 = vpop.f32.mrb[8].mxu1  ;;  %v4451_v39 = vsel %vm4380_vm5, 1.0, %v5086_v10  ;;  %v642_v59 = vsel %vm4430_vm4, %v606_v22, %v4370_v25  ;;  %vm4481_vm8 = vmand %vm536_vm11, %vm500_vm9 }
  0xf2   :  { %5097 = vst [vmem:[#allocation19_spill] sm:$0xff] %v4416_v63  ;;  %v1037_v30 = vadd.f32 %v2527_v43, %v4270_v12  ;;  %v1031_v32 = vpop.f32.mrb[9].mxu0  ;;  %v4424_v6 = vpop.f32.mrb[9].mxu1  ;;  %v1213_v5 = vmul.f32 %v3819_v62, %v1177_v27  ;;  %v4461_v27 = vsel %vm4410_vm0, 1.0, %v5086_v10  ;;  %v4472_v44 = vsel %vm4418_vm12, 1.0, %v5086_v10 }
  0xf3   :  { %5100 = vst [vmem:[#allocation20_spill] sm:$0xff] %v4424_v6  ;;  %v1212_v55 = vmul.f32 %v3937_v51, %v1176_v1  ;;  %v1246_v28 = vadd.f32 %v1245_v53, %v1211_v13  ;;  %v1032_v36 = vadd.f32 %v4270_v12, %v1031_v32  ;;  %v4456_v13 = vsel %vm4384_vm6, 1.0, %v5086_v10 }
  0xf4   :  { %v1179_v18 = vmax.f32 %v1037_v30, 0.0  ;;  %v608_v30 = vadd.s32 18, %v4405_v16  ;;  %vm4489_vm5 = vcmp.lt.s32.totalorder %v642_v59, 16  ;;  %vm2123_vm3 = vcmask 523264  }
  0xf5   :  { %v1247_v53 = vadd.f32 %v1246_v28, %v1212_v55  ;;  %v1178_v1 = vmax.f32 %v1032_v36, 0.0  ;;  %v2530_v43 = vpop.f32.mrb[10].mxu0  ;;  %v2579_v32 = vpop.f32.mrb[10].mxu1  ;;  %v645_v55 = vsel %vm4444_vm13, %v609_v26, %v4389_v40  ;;  %vm2198_vm12 = vcmask 1041408  }
  0xf6   :  { %v1047_v63 = vadd.f32 %v2530_v43, %v4270_v12  ;;  %v1501_v23 = vadd.f32 %v2579_v32, %v4270_v12  ;;  %v1041_v6 = vpop.f32.mrb[11].mxu0  ;;  %v1495_v56 = vpop.f32.mrb[11].mxu1  ;;  %v1215_v22 = vmul.f32 %v3950_v7, %v1179_v18  ;;  %vm4493_vm6 = vcmp.lt.s32.totalorder %v645_v55, 16 }
  0xf7   :  { %v1214_v8 = vmul.f32 %v4115_v0, %v1178_v1  ;;  %v1248_v28 = vadd.f32 %v1247_v53, %v1213_v5  ;;  %v1042_v61 = vadd.f32 %v4270_v12, %v1041_v6  ;;  %v1496_v34 = vadd.f32 %v4270_v12, %v1495_v56 }
  0xf8   :  { %v1181_v36 = vmax.f32 %v1047_v63, 0.0  ;;  %v1675_v43 = vmax.f32 %v1501_v23, 0.0  ;;  %v644_v6 = vsel %vm4481_vm8, %v608_v30, %v4405_v16 }
  0xf9   :  { %v1249_v26 = vadd.f32 %v1248_v28, %v1214_v8  ;;  %v1180_v32 = vmax.f32 %v1042_v61, 0.0  ;;  %v2533_v17 = vpop.f32.mrb[12].mxu0  ;;  %v2582_v35 = vpop.f32.mrb[12].mxu1  ;;  %v1674_v5 = vmax.f32 %v1496_v34, 0.0  ;;  %vm4518_vm14 = vcmp.lt.s32.totalorder %v644_v6, 16 }
  0xfa   :  { %v1217_v63 = vmul.f32 %v4222_v60, %v1181_v36  ;;  %v1711_v56 = vmul.f32 %v3488_v42, %v1675_v43  ;;  %v1057_v18 = vadd.f32 %v2533_v17, %v4270_v12  ;;  %v1051_v53 = vpop.f32.mrb[13].mxu0  ;;  %v1505_v1 = vpop.f32.mrb[13].mxu1  ;;  %v1511_v55 = vadd.f32 %v2582_v35, %v4270_v12 }
  0xfb   :  { %v1216_v59 = vmul.f32 %v4238_v58, %v1180_v32  ;;  %v1250_v23 = vadd.f32 %v1249_v26, %v1215_v22  ;;  %v1052_v8 = vadd.f32 %v4270_v12, %v1051_v53  ;;  %v1710_v28 = vmul.f32 %v3560_v15, %v1674_v5 }
  0xfc   :  { %v1183_v25 = vmax.f32 %v1057_v18, 0.0  ;;  %v1506_v16 = vadd.f32 %v4270_v12, %v1505_v1  ;;  %v4511_v42 = vsel %vm4489_vm5, 1.0, %v5086_v10  ;;  %v4516_v35 = vsel %vm4493_vm6, 1.0, %v5086_v10 }
  0xfd   :  { %v1251_v17 = vadd.f32 %v1250_v23, %v1216_v59  ;;  %v1182_v30 = vmax.f32 %v1052_v8, 0.0  ;;  %v2536_v61 = vpop.f32.mrb[14].mxu0  ;;  %v2585_v36 = vpop.f32.mrb[14].mxu1  ;;  %v1746_v15 = vadd.f32 %v1711_v56, %v1710_v28  ;;  %v1677_v43 = vmax.f32 %v1511_v55, 0.0 }
  0xfe   :  { %v1676_v34 = vmax.f32 %v1506_v16, 0.0  ;;  %v1067_v40 = vadd.f32 %v2536_v61, %v4270_v12  ;;  %v1061_v26 = vpop.f32.mrb[15].mxu0  ;;  %v1515_v32 = vpop.f32.mrb[15].mxu1  ;;  %v1219_v5 = vmul.f32 %v4243_v9, %v1183_v25  ;;  %v1521_v2 = vadd.f32 %v2585_v36, %v4270_v12 }
  0xff   :  { %v1218_v18 = vmul.f32 %v4248_v11, %v1182_v30  ;;  %v1252_v53 = vadd.f32 %v1251_v17, %v1217_v63  ;;  %v1062_v59 = vadd.f32 %v4270_v12, %v1061_v26  ;;  %v1516_v56 = vadd.f32 %v4270_v12, %v1515_v32 }
 0x100   :  { %v1712_v1 = vmul.f32 %v3657_v50, %v1676_v34  ;;  %v1185_v6 = vmax.f32 %v1067_v40, 0.0  ;;  %v4531_v23 = vadd.f32 %v4272_v14, %v4270_v12  ;;  %v1679_v8 = vmax.f32 %v1521_v2, 0.0 }
 0x101   :  { %v1253_v55 = vadd.f32 %v1252_v53, %v1218_v18  ;;  %v2539_v28 = vpop.f32.mrb[16].mxu0  ;;  %v2588_v25 = vpop.f32.mrb[16].mxu1  ;;  %v4536_v63 = vsel %vm4518_vm14, 1.0, %v5086_v10  ;;  %v1713_v50 = vmul.f32 %v3652_v48, %v1677_v43  ;;  %v1184_v17 = vmax.f32 %v1062_v59, 0.0 }
 0x102   :  { %v1747_v16 = vadd.f32 %v1746_v15, %v1712_v1  ;;  %v1678_v30 = vmax.f32 %v1516_v56, 0.0  ;;  %v1071_v61 = vpop.f32.mrb[17].mxu0  ;;  %v1525_v36 = vpop.f32.mrb[17].mxu1  ;;  %v1221_v34 = vmul.f32 %v4253_v20, %v1185_v6  ;;  %v1077_v40 = vadd.f32 %v2539_v28, %v4270_v12 }
 0x103   :  { %v1254_v14 = vadd.f32 %v1253_v55, %v1219_v5  ;;  %v1531_v26 = vadd.f32 %v2588_v25, %v4270_v12  ;;  %v1220_v32 = vmul.f32 %v4258_v49, %v1184_v17  ;;  %v1072_v53 = vadd.f32 %v4270_v12, %v1071_v61 }
 0x104   :  { %v1714_v22 = vmul.f32 %v3794_v47, %v1678_v30  ;;  %v1748_v18 = vadd.f32 %v1747_v16, %v1713_v50  ;;  %v4547_v48 = vadd.f32 %v4270_v12, %v4282_v45  ;;  %v1715_v15 = vmul.f32 %v3675_v57, %v1679_v8 }
 0x105   :  { %v1187_v43 = vmax.f32 %v1077_v40, 0.0  ;;  %v1526_v5 = vadd.f32 %v4270_v12, %v1525_v36  ;;  %v2542_v2 = vpop.f32.mrb[18].mxu0  ;;  %v2591_v1 = vpop.f32.mrb[18].mxu1  ;;  %v1255_v6 = vadd.f32 %v1254_v14, %v1220_v32  ;;  %v1186_v56 = vmax.f32 %v1072_v53, 0.0 }
 0x106   :  { %v1749_v59 = vadd.f32 %v1748_v18, %v1714_v22  ;;  %v1087_v55 = vadd.f32 %v2542_v2, %v4270_v12  ;;  %v1081_v47 = vpop.f32.mrb[19].mxu0  ;;  %v1535_v28 = vpop.f32.mrb[19].mxu1  ;;  %v1681_v50 = vmax.f32 %v1531_v26, 0.0  ;;  %v1541_v45 = vadd.f32 %v2591_v1, %v4270_v12 }
 0x107   :  { %v1223_v25 = vmul.f32 %v4292_v3, %v1187_v43  ;;  %v1680_v16 = vmax.f32 %v1526_v5, 0.0  ;;  %v1222_v57 = vmul.f32 %v4359_v38, %v1186_v56  ;;  %v1256_v8 = vadd.f32 %v1255_v6, %v1221_v34 }
 0x108   :  { %v1750_v17 = vadd.f32 %v1749_v59, %v1715_v15  ;;  %v1189_v30 = vmax.f32 %v1087_v55, 0.0  ;;  %v1197_v61 = vmax.f32 %v4531_v23, 0.0  ;;  %v1082_v14 = vadd.f32 %v4270_v12, %v1081_v47 }
 0x109   :  { %v1716_v36 = vmul.f32 %v3937_v51, %v1680_v16  ;;  %v1536_v40 = vadd.f32 %v4270_v12, %v1535_v28  ;;  %v2545_v32 = vpop.f32.mrb[20].mxu0  ;;  %v2594_v22 = vpop.f32.mrb[20].mxu1  ;;  %v1257_v18 = vadd.f32 %v1256_v8, %v1222_v57  ;;  %v1683_v26 = vmax.f32 %v1541_v45, 0.0 }
 0x10a   :  { %v1097_v53 = vadd.f32 %v2545_v32, %v4270_v12  ;;  %v1551_v43 = vadd.f32 %v2594_v22, %v4270_v12  ;;  %v1091_v5 = vpop.f32.mrb[21].mxu0  ;;  %v1545_v34 = vpop.f32.mrb[21].mxu1  ;;  %v1717_v15 = vmul.f32 %v3819_v62, %v1681_v50  ;;  %v1188_v1 = vmax.f32 %v1082_v14, 0.0 }
 0x10b   :  { %v1751_v2 = vadd.f32 %v1750_v17, %v1716_v36  ;;  %v1682_v6 = vmax.f32 %v1536_v40, 0.0  ;;  %v1225_v51 = vmul.f32 %v4378_v24, %v1189_v30  ;;  %v1258_v59 = vadd.f32 %v1257_v18, %v1223_v25 }
 0x10c   :  { %v1191_v56 = vmax.f32 %v1097_v53, 0.0  ;;  %v1092_v55 = vadd.f32 %v4270_v12, %v1091_v5  ;;  %v1224_v47 = vmul.f32 %v4451_v39, %v1188_v1  ;;  %v1546_v45 = vadd.f32 %v4270_v12, %v1545_v34 }
 0x10d   :  { %v1718_v28 = vmul.f32 %v4115_v0, %v1682_v6  ;;  %v1752_v16 = vadd.f32 %v1751_v2, %v1717_v15  ;;  %v2548_v57 = vpop.f32.mrb[22].mxu0  ;;  %v2597_v8 = vpop.f32.mrb[22].mxu1  ;;  %v1719_v62 = vmul.f32 %v3950_v7, %v1683_v26  ;;  %v1685_v50 = vmax.f32 %v1551_v43, 0.0 }
 0x10e   :  { %v1190_v17 = vmax.f32 %v1092_v55, 0.0  ;;  %v1107_v36 = vadd.f32 %v2548_v57, %v4270_v12  ;;  %v1101_v30 = vpop.f32.mrb[23].mxu0  ;;  %v1555_v25 = vpop.f32.mrb[23].mxu1  ;;  %v1259_v14 = vadd.f32 %v1258_v59, %v1224_v47  ;;  %v1684_v32 = vmax.f32 %v1546_v45, 0.0 }
 0x10f   :  { %v1753_v40 = vadd.f32 %v1752_v16, %v1718_v28  ;;  %v1561_v22 = vadd.f32 %v2597_v8, %v4270_v12  ;;  %v1102_v53 = vadd.f32 %v4270_v12, %v1101_v30  ;;  %v1556_v5 = vadd.f32 %v4270_v12, %v1555_v25 }
 0x110   :  { %v1226_v0 = vmul.f32 %v4461_v27, %v1190_v17  ;;  %v1193_v18 = vmax.f32 %v1107_v36, 0.0  ;;  %v1227_v7 = vmul.f32 %v4456_v13, %v1191_v56  ;;  %v1260_v26 = vadd.f32 %v1259_v14, %v1225_v51 }
 0x111   :  { %v1720_v43 = vmul.f32 %v4238_v58, %v1684_v32  ;;  %v1754_v34 = vadd.f32 %v1753_v40, %v1719_v62  ;;  %v2551_v15 = vpop.f32.mrb[24].mxu0  ;;  %v2600_v2 = vpop.f32.mrb[24].mxu1  ;;  %v1687_v1 = vmax.f32 %v1561_v22, 0.0  ;;  %v1192_v6 = vmax.f32 %v1102_v53, 0.0 }
 0x112   :  { %v1686_v59 = vmax.f32 %v1556_v5, 0.0  ;;  %v1117_v55 = vadd.f32 %v2551_v15, %v4270_v12  ;;  %v1111_v47 = vpop.f32.mrb[25].mxu0  ;;  %v1565_v28 = vpop.f32.mrb[25].mxu1  ;;  %v1721_v16 = vmul.f32 %v4222_v60, %v1685_v50  ;;  %v1261_v45 = vadd.f32 %v1260_v26, %v1226_v0 }
 0x113   :  { %v1755_v57 = vadd.f32 %v1754_v34, %v1720_v43  ;;  %v1571_v8 = vadd.f32 %v2600_v2, %v4270_v12  ;;  %v1229_v51 = vmul.f32 %v4472_v44, %v1193_v18  ;;  %v1228_v58 = vmul.f32 %v4511_v42, %v1192_v6 }
 0x114   :  { %v1722_v56 = vmul.f32 %v4248_v11, %v1686_v59  ;;  %v1112_v62 = vadd.f32 %v4270_v12, %v1111_v47  ;;  %v1262_v17 = vadd.f32 %v1261_v45, %v1227_v7  ;;  %v1195_v30 = vmax.f32 %v1117_v55, 0.0 }
 0x115   :  { %v1756_v36 = vadd.f32 %v1755_v57, %v1721_v16  ;;  %v1566_v25 = vadd.f32 %v4270_v12, %v1565_v28  ;;  %v2603_v14 = vpop.f32.mrb[26].mxu1  ;;  %v1196_v60 = vmax.f32 %v4547_v48, 0.0  ;;  %v1723_v50 = vmul.f32 %v4243_v9, %v1687_v1 }
 0x116   :  { %v1194_v40 = vmax.f32 %v1112_v62, 0.0  ;;  %v1581_v32 = vadd.f32 %v2603_v14, %v4270_v12  ;;  %v1575_v22 = vpop.f32.mrb[27].mxu1  ;;  %v1263_v0 = vadd.f32 %v1262_v17, %v1228_v58  ;;  %v1689_v53 = vmax.f32 %v1571_v8, 0.0 }
 0x117   :  { %v1757_v18 = vadd.f32 %v1756_v36, %v1722_v56  ;;  %v1688_v11 = vmax.f32 %v1566_v25, 0.0  ;;  %v1233_v5 = vmul.f32 %v3478_v33, %v1197_v61  ;;  %v1132_v7 = vadd.f32 %v4270_v12, %v4328_v37 }
 0x118   :  { %v1230_v26 = vmul.f32 %v4536_v63, %v1194_v40  ;;  %v1576_v48 = vadd.f32 %v4270_v12, %v1575_v22  ;;  %v1231_v9 = vmul.f32 %v4516_v35, %v1195_v30  ;;  %v1264_v43 = vadd.f32 %v1263_v0, %v1229_v51  ;;  %v5116_v51 = vld [vmem:[#allocation15_spill] sm:$0xff] }
 0x119   :  { %v1724_v34 = vmul.f32 %v4258_v49, %v1688_v11  ;;  %v1758_v15 = vadd.f32 %v1757_v18, %v1723_v50  ;;  %v2606_v2 = vpop.f32.mrb[28].mxu1  ;;  %v1137_v1 = vadd.f32 %v4310_v46, %v4270_v12  ;;  %v1691_v23 = vmax.f32 %v1581_v32, 0.0  ;;  %v5120_v50 = vld [vmem:[#allocation17_spill] sm:$0xff]  ;;  %v5121_v32 = vld [vmem:[#allocation18_spill] sm:$0xff]  ;;  %v5122_v0 = vld [vmem:[#allocation11_spill] sm:$0xff] }
 0x11a   :  { %v1690_v6 = vmax.f32 %v1576_v48, 0.0  ;;  %v1591_v61 = vadd.f32 %v2606_v2, %v4270_v12  ;;  %v1585_v59 = vpop.f32.mrb[29].mxu1  ;;  %v1725_v37 = vmul.f32 %v4253_v20, %v1689_v53  ;;  %v1265_v55 = vadd.f32 %v1264_v43, %v1230_v26  ;;  %v5123_v26 = vld [vmem:[#allocation10_spill] sm:$0xff] }
 0x11b   :  { %v1759_v47 = vadd.f32 %v1758_v15, %v1724_v34  ;;  %v1586_v28 = vadd.f32 %v4270_v12, %v1585_v59  ;;  %v1232_v16 = vmul.f32 %v3483_v41, %v1196_v60  ;;  %v1147_v49 = vadd.f32 %v4341_v19, %v4270_v12 }
 0x11c   :  { %v1142_v45 = vadd.f32 %v4270_v12, %v4354_v52  ;;  %v1726_v46 = vmul.f32 %v4359_v38, %v1690_v6  ;;  %v1198_v57 = vmax.f32 %v1132_v7, 0.0  ;;  %v5113_v20 = vsel %vm3895_vm10, %v3884_v29, %v3805_v54  ;;  %v5124_v6 = vld [vmem:[#allocation12_spill] sm:$0xff] }
 0x11d   :  { %vm4611_vm15 = vcmp.lt.s32.totalorder %v5113_v20, 16  ;;  %v5117_v19 = vsel %vm4094_vm1, %v3964_v4, %v5116_v51  ;;  %v1266_v52 = vadd.f32 %v1265_v55, %v1231_v9  ;;  %v1760_v38 = vadd.f32 %v1759_v47, %v1725_v37  ;;  %v2609_v31 = vpop.f32.mrb[30].mxu1  ;;  %v5126_v47 = vld [vmem:[#allocation20_spill] sm:$0xff] }
 0x11e   :  { %vm4620_vm0 = vcmp.lt.s32.totalorder %v5117_v19, 16  ;;  %v1692_v56 = vmax.f32 %v1586_v28, 0.0  ;;  %v1199_v62 = vmax.f32 %v1137_v1, 0.0  ;;  %v1727_v54 = vmul.f32 %v4292_v3, %v1691_v23  ;;  %v1595_v36 = vpop.f32.mrb[31].mxu1 }
 0x11f   :  { %v1693_v29 = vmax.f32 %v1591_v61, 0.0  ;;  %v1601_v17 = vadd.f32 %v2609_v31, %v4270_v12  ;;  %v1267_v30 = vadd.f32 %v1266_v52, %v1232_v16  ;;  %v1761_v21 = vadd.f32 %v1760_v38, %v1726_v46  ;;  %v5127_v46 = vld [vmem:[#allocation19_spill] sm:$0xff] }
 0x120   :  { %v1728_v25 = vmul.f32 %v4451_v39, %v1692_v56  ;;  %v1596_v4 = vadd.f32 %v4270_v12, %v1595_v36  ;;  %v1201_v14 = vmax.f32 %v1147_v49, 0.0  ;;  %v1200_v60 = vmax.f32 %v1142_v45, 0.0 }
 0x121   :  { %v1157_v40 = vadd.f32 %v5120_v50, %v4270_v12  ;;  %v1152_v22 = vadd.f32 %v4270_v12, %v5121_v32  ;;  %v1234_v3 = vmul.f32 %v5122_v0, %v1198_v57  ;;  %v1268_v18 = vadd.f32 %v1267_v30, %v1233_v5  ;;  %v2612_v7 = vpop.f32.mrb[32].mxu1  ;;  %v5125_v5 = vld [vmem:[#allocation13_spill] sm:$0xff] }
 0x122   :  { %v1762_v53 = vadd.f32 %v1761_v21, %v1727_v54  ;;  %v1694_v11 = vmax.f32 %v1596_v4, 0.0  ;;  %v1235_v48 = vmul.f32 %v5123_v26, %v1199_v62  ;;  %v1729_v39 = vmul.f32 %v4378_v24, %v1693_v29  ;;  %v1605_v34 = vpop.f32.mrb[33].mxu1  ;;  %v5128_v62 = vld [vmem:[#allocation14_spill] sm:$0xff]  ;;  %v5129_v29 = vld [vmem:[#allocation16_spill] sm:$0xff] }
 0x123   :  { %v1695_v9 = vmax.f32 %v1601_v17, 0.0  ;;  %v1611_v43 = vadd.f32 %v2612_v7, %v4270_v12  ;;  %v1269_v15 = vadd.f32 %v1268_v18, %v1234_v3  ;;  %v1606_v23 = vadd.f32 %v4270_v12, %v1605_v34 }
 0x124   :  { %v1763_v2 = vadd.f32 %v1762_v53, %v1728_v25  ;;  %v1730_v1 = vmul.f32 %v4461_v27, %v1694_v11  ;;  %v1237_v61 = vmul.f32 %v5124_v6, %v1201_v14  ;;  %v1236_v59 = vmul.f32 %v5125_v5, %v1200_v60 }
 0x125   :  { %v1203_v37 = vmax.f32 %v1157_v40, 0.0  ;;  %v1202_v55 = vmax.f32 %v1152_v22, 0.0  ;;  %v1162_v28 = vadd.f32 %v4270_v12, %v5126_v47  ;;  %v1270_v24 = vadd.f32 %v1269_v15, %v1235_v48  ;;  %v2615_v45 = vpop.f32.mrb[34].mxu1 }
 0x126   :  { %v1764_v16 = vadd.f32 %v1763_v2, %v1729_v39  ;;  %v1696_v49 = vmax.f32 %v1606_v23, 0.0  ;;  %v1167_v57 = vadd.f32 %v5127_v46, %v4270_v12  ;;  %v1731_v27 = vmul.f32 %v4456_v13, %v1695_v9  ;;  %v1615_v19 = vpop.f32.mrb[35].mxu1 }
 0x127   :  { %v1697_v20 = vmax.f32 %v1611_v43, 0.0  ;;  %v1621_v51 = vadd.f32 %v2615_v45, %v4270_v12  ;;  %v1271_v52 = vadd.f32 %v1270_v24, %v1236_v59  ;;  %v1616_v31 = vadd.f32 %v4270_v12, %v1615_v19 }
 0x128   :  { %v1765_v38 = vadd.f32 %v1764_v16, %v1730_v1  ;;  %v1732_v56 = vmul.f32 %v4511_v42, %v1696_v49  ;;  %v1239_v54 = vmul.f32 %v5128_v62, %v1203_v37  ;;  %v1238_v17 = vmul.f32 %v5129_v29, %v1202_v55 }
 0x129   :  { %v4653_v36 = vsel %vm4611_vm15, 1.0, %v5086_v10  ;;  %v4658_v13 = vsel %vm4620_vm0, 1.0, %v5086_v10  ;;  %v1204_v30 = vmax.f32 %v1162_v28, 0.0  ;;  %v1272_v21 = vadd.f32 %v1271_v52, %v1237_v61  ;;  %v2618_v4 = vpop.f32.mrb[36].mxu1 }
 0x12a   :  { %v1766_v25 = vadd.f32 %v1765_v38, %v1731_v27  ;;  %v1698_v42 = vmax.f32 %v1616_v31, 0.0  ;;  %v1205_v14 = vmax.f32 %v1167_v57, 0.0  ;;  %v1733_v60 = vmul.f32 %v4472_v44, %v1697_v20  ;;  %v1625_v32 = vpop.f32.mrb[37].mxu1 }
 0x12b   :  { %v1699_v50 = vmax.f32 %v1621_v51, 0.0  ;;  %v1631_v40 = vadd.f32 %v2618_v4, %v4270_v12  ;;  %v1273_v8 = vadd.f32 %v1272_v21, %v1238_v17  ;;  %v1626_v58 = vadd.f32 %v4270_v12, %v1625_v32 }
 0x12c   :  { %v1767_v22 = vadd.f32 %v1766_v25, %v1732_v56  ;;  %v1734_v3 = vmul.f32 %v4536_v63, %v1698_v42  ;;  %v1240_v18 = vmul.f32 %v4658_v13, %v1204_v30  ;;  %v1241_v39 = vmul.f32 %v4653_v36, %v1205_v14 }
 0x12d   :  { %v1700_v11 = vmax.f32 %v1626_v58, 0.0  ;;  %v2621_v7 = vpop.f32.mrb[38].mxu1  ;;  %v1274_v48 = vadd.f32 %v1273_v8, %v1239_v54  ;;  %v1735_v44 = vmul.f32 %v4516_v35, %v1699_v50  ;;  %v1701_v9 = vmax.f32 %v1631_v40, 0.0 }
 0x12e   :  { %v1768_v53 = vadd.f32 %v1767_v22, %v1733_v60  ;;  %v1641_v43 = vadd.f32 %v2621_v7, %v4270_v12  ;;  %v1635_v34 = vpop.f32.mrb[39].mxu1  ;;  %vm1788_vm10 = vcmask 1040384  }
 0x12f   :  { %v1736_v2 = vmul.f32 %v3483_v41, %v1700_v11  ;;  %v1636_v63 = vadd.f32 %v4270_v12, %v1635_v34  ;;  %v1275_v1 = vadd.f32 %v1274_v48, %v1240_v18  ;;  %v1737_v55 = vmul.f32 %v3478_v33, %v1701_v9 }
 0x130   :  { %v1769_v15 = vadd.f32 %v1768_v53, %v1734_v3  ;;  %v1703_v24 = vmax.f32 %v1641_v43, 0.0 }
 0x131   :  { %v1702_v61 = vmax.f32 %v1636_v63, 0.0  ;;  %v2624_v59 = vpop.f32.mrb[40].mxu1  ;;  %v1276_v37 = vadd.f32 %v1275_v1, %v1241_v39  ;;  %v1888_v63 = vld [vmem:[%s4940_s5 + $0x18] sm:$0xff] }
 0x132   :  { %v1770_v23 = vadd.f32 %v1769_v15, %v1735_v44  ;;  %v1651_v47 = vadd.f32 %v2624_v59, %v4270_v12  ;;  %v1645_v28 = vpop.f32.mrb[41].mxu1  ;;  %v1739_v51 = vmul.f32 %v5123_v26, %v1703_v24  ;;  %v5130_v15 = vmov 0.0|0.0  }
 0x133   :  { %v1738_v16 = vmul.f32 %v5122_v0, %v1702_v61  ;;  %v1646_v49 = vadd.f32 %v4270_v12, %v1645_v28  ;;  %v1277_v30 = vrot.slane %v1276_v37, 4  ;;  %v1974_v61 = vld [vmem:[%s4942_s7 + $0x18] sm:$0xff] }
 0x134   :  { %v1771_v35 = vadd.f32 %v1770_v23, %v1736_v2  ;;  %v1705_v57 = vmax.f32 %v1651_v47, 0.0  ;;  %v1887_v2 = vld [vmem:[%s4940_s5 + $0x10] sm:$0xff]  ;;  %v1972_v23 = vld [vmem:[%s4942_s7 + $0x8] sm:$0xff] }
 0x135   :  { %v1704_v41 = vmax.f32 %v1646_v49, 0.0  ;;  %v2627_v46 = vpop.f32.mrb[42].mxu1  ;;  %v2721_v1 = vpack.c.bf16 %v1888_v63, %v1887_v2  ;;  %v2723_v59 = vpack.c.bf16 %v1974_v61, %v1972_v23  ;;  %v2094_v47 = vld [vmem:[%s4944_s9 + $0x10] sm:$0xff]  ;;  %v2097_v49 = vld [vmem:[%s4944_s9 + $0x28] sm:$0xff]  ;;  %v1998_v2 = vld [vmem:[%s4942_s7 + $0xd8] sm:$0xff] }
 0x136   :  { %v1772_v45 = vadd.f32 %v1771_v35, %v1737_v55  ;;  %v1661_v27 = vadd.f32 %v2627_v46, %v4270_v12  ;;  %v1655_v20 = vpop.f32.mrb[43].mxu1  ;;  %v1741_v0 = vmul.f32 %v5124_v6, %v1705_v57  ;;  %v2093_v55 = vld [vmem:[%s4944_s9 + $0x8] sm:$0xff]  ;;  %v2095_v35 = vld [vmem:[%s4944_s9 + $0x18] sm:$0xff]  ;;  %v1995_v23 = vld [vmem:[%s4942_s7 + $0xc0] sm:$0xff] }
 0x137   :  { %v1740_v33 = vmul.f32 %v5125_v5, %v1704_v41  ;;  %v1656_v52 = vadd.f32 %v4270_v12, %v1655_v20  ;;  %v1278_v5 = vadd.f32 %v1277_v30, %v1276_v37  ;;  %v2092_v37 = vld [vmem:[%s4944_s9] sm:$0xff]  ;;  %v2759_v24 = vpack.c.bf16 %v2095_v35, %v2094_v47  ;;  %v2098_v41 = vld [vmem:[%s4944_s9 + $0x30] sm:$0xff]  ;;  %v2099_v46 = vld [vmem:[%s4944_s9 + $0x38] sm:$0xff] }
 0x138   :  { %v1773_v19 = vadd.f32 %v1772_v45, %v1738_v16  ;;  %v1707_v54 = vmax.f32 %v1661_v27, 0.0  ;;  %v2756_v28 = vpack.c.bf16 %v2093_v55, %v2092_v37  ;;  %v2096_v16 = vld [vmem:[%s4944_s9 + $0x20] sm:$0xff]  ;;  %v2765_v57 = vpack.c.bf16 %v2099_v46, %v2098_v41  ;;  %v2101_v20 = vld [vmem:[%s4944_s9 + $0x48] sm:$0xff]  ;;  %v1997_v61 = vld [vmem:[%s4942_s7 + $0xd0] sm:$0xff] }
 0x139   :  { %v1706_v56 = vmax.f32 %v1656_v52, 0.0  ;;  %v2630_v31 = vpop.f32.mrb[44].mxu1  ;;  %v1279_v3 = vrot.slane %v1278_v5, 2  ;;  %v2762_v45 = vpack.c.bf16 %v2097_v49, %v2096_v16  ;;  %v2100_v27 = vld [vmem:[%s4944_s9 + $0x40] sm:$0xff]  ;;  %v2002_v37 = vld [vmem:[%s4942_s7 + $0xf8] sm:$0xff]  ;;  %v2749_v55 = vpack.c.bf16 %v1997_v61, %v1995_v23  ;;  %v2001_v35 = vld [vmem:[%s4942_s7 + $0xf0] sm:$0xff] }
 0x13a   :  { %v1774_v38 = vadd.f32 %v1773_v19, %v1739_v51  ;;  %v1665_v17 = vpop.f32.mrb[45].mxu1  ;;  %v1671_v42 = vadd.f32 %v2630_v31, %v4270_v12  ;;  %v1743_v60 = vmul.f32 %v5128_v62, %v1707_v54  ;;  %v1885_v62 = vld [vmem:[%s4940_s5] sm:$0xff]  ;;  %2757 = vmatpush1.bf16.msra.mxu1 %v2756_v28  ;;  %v2768_v51 = vpack.c.bf16 %v2101_v20, %v2100_v27  ;;  %v2102_v19 = vld [vmem:[%s4944_s9 + $0x50] sm:$0xff]  ;;  %v1976_v54 = vld [vmem:[%s4942_s7 + $0x28] sm:$0xff] }
 0x13b   :  { %v1742_v25 = vmul.f32 %v5129_v29, %v1706_v56  ;;  %v1666_v26 = vadd.f32 %v4270_v12, %v1665_v17  ;;  %v1280_v18 = vadd.f32 %v1279_v3, %v1278_v5  ;;  %2758 = vmatprep.subr.bf16.mxu1 %v5130_v15  ;;  %v1971_v56 = vld [vmem:[%s4942_s7] sm:$0xff]  ;;  %v1973_v31 = vld [vmem:[%s4942_s7 + $0x10] sm:$0xff]  ;;  %v1978_v17 = vld [vmem:[%s4942_s7 + $0x38] sm:$0xff] }
 0x13c   :  { %v1775_v21 = vadd.f32 %v1774_v38, %v1740_v33  ;;  %v1709_v40 = vmax.f32 %v1671_v42, 0.0  ;;  %v2103_v33 = vld [vmem:[%s4944_s9 + $0x58] sm:$0xff]  ;;  %v2394_v38 = vld [vmem:[%s4939_s4] ss:$0 sm:$0xff]  ;;  %v1980_v5 = vld [vmem:[%s4942_s7 + $0x48] sm:$0xff] }
 0x13d   :  { %v1708_v14 = vmax.f32 %v1666_v26, 0.0  ;;  %v1281_v12 = vrot.slane %v1280_v18, 1  ;;  %v2771_v52 = vpack.c.bf16 %v2103_v33, %v2102_v19  ;;  %v2727_v26 = vpack.c.bf16 %v1978_v17, %v1976_v54  ;;  %v1999_v28 = vld [vmem:[%s4942_s7 + $0xe0] sm:$0xff]  ;;  %v2105_v49 = vld [vmem:[%s4944_s9 + $0x68] sm:$0xff]  ;;  %v2107_v46 = vld [vmem:[%s4944_s9 + $0x78] sm:$0xff] }
 0x13e   :  { %v1776_v4 = vadd.f32 %v1775_v21, %v1741_v0  ;;  %v1745_v8 = vmul.f32 %v4653_v36, %v1709_v40  ;;  %2760 = vmatpush1.bf16.msra.mxu1 %v2759_v24  ;;  %v2753_v24 = vpack.c.bf16 %v2001_v35, %v1999_v28  ;;  %v2104_v16 = vld [vmem:[%s4944_s9 + $0x60] sm:$0xff]  ;;  %v2109_v27 = vld [vmem:[%s4944_s9 + $0x88] sm:$0xff]  ;;  %v2111_v19 = vld [vmem:[%s4944_s9 + $0x98] sm:$0xff] }
 0x13f   :  { %v1744_v32 = vmul.f32 %v4658_v13, %v1708_v14  ;;  %v1282_v48 = vadd.f32 %v1281_v12, %v1280_v18  ;;  %v1886_v13 = vld [vmem:[%s4940_s5 + $0x8] sm:$0xff]  ;;  %2761 = vmatprep.subr.bf16.mxu1 %v5130_v15  ;;  %v1977_v14 = vld [vmem:[%s4942_s7 + $0x30] sm:$0xff]  ;;  %v2774_v41 = vpack.c.bf16 %v2105_v49, %v2104_v16  ;;  %v2395_v17 = vld [vmem:[%s4941_s6] ss:$0 sm:$0xff] }
 0x140   :  { %v1777_v50 = vadd.f32 %v1776_v4, %v1742_v25  ;;  %v2718_v43 = vpack.c.bf16 %v1886_v13, %v1885_v62  ;;  %v2725_v25 = vpack.c.bf16 %v1973_v31, %v1971_v56  ;;  %v1975_v4 = vld [vmem:[%s4942_s7 + $0x20] sm:$0xff]  ;;  %v1988_v18 = vld [vmem:[%s4942_s7 + $0x88] sm:$0xff]  ;;  %v1994_v62 = vld [vmem:[%s4942_s7 + $0xb8] sm:$0xff] }
 0x141   :  { %v1283_v44 = vmul.f32 0.00390625, %v1282_v48  ;;  %v1989_v48 = vld [vmem:[%s4942_s7 + $0x90] sm:$0xff] }
 0x142   :  { %v1778_v6 = vadd.f32 %v1777_v50, %v1743_v60  ;;  %2763 = vmatpush1.bf16.msra.mxu1 %v2762_v45  ;;  %v1982_v60 = vld [vmem:[%s4942_s7 + $0x58] sm:$0xff]  ;;  %v2729_v50 = vpack.c.bf16 %v1977_v14, %v1975_v4  ;;  %v2106_v45 = vld [vmem:[%s4944_s9 + $0x70] sm:$0xff] }
 0x143   :  { %2764 = vmatprep.subr.bf16.mxu1 %v5130_v15  ;;  %v2731_v40 = vpack.c.bf16 %v1982_v60, %v1980_v5  ;;  %v2114_v31 = vld [vmem:[%s4944_s9 + $0xb0] sm:$0xff] }
 0x144   :  { %v1779_v22 = vadd.f32 %v1778_v6, %v1744_v32  ;;  %v1979_v32 = vld [vmem:[%s4942_s7 + $0x40] sm:$0xff]  ;;  %v1981_v6 = vld [vmem:[%s4942_s7 + $0x50] sm:$0xff] }
 0x146   :  { %v1780_v58 = vadd.f32 %v1779_v22, %v1745_v8  ;;  %2766 = vmatpush1.bf16.msra.mxu1 %v2765_v57  ;;  %v1984_v8 = vld [vmem:[%s4942_s7 + $0x68] sm:$0xff]  ;;  %v1986_v22 = vld [vmem:[%s4942_s7 + $0x78] sm:$0xff]  ;;  %v2777_v57 = vpack.c.bf16 %v2107_v46, %v2106_v45 }
 0x147   :  { %2767 = vmatprep.subr.bf16.mxu1 %v5130_v15  ;;  %v2735_v3 = vpack.c.bf16 %v1986_v22, %v1984_v8 }
 0x148   :  { %v1781_v29 = vrot.slane %v1780_v58, 4 }
 0x14a   :  { %v1782_v53 = vadd.f32 %v1781_v29, %v1780_v58  ;;  %2769 = vmatpush1.bf16.msra.mxu1 %v2768_v51  ;;  %v1983_v58 = vld [vmem:[%s4942_s7 + $0x60] sm:$0xff]  ;;  %v1985_v29 = vld [vmem:[%s4942_s7 + $0x70] sm:$0xff] }
 0x14b   :  { %2770 = vmatprep.subr.bf16.mxu1 %v5130_v15  ;;  %v2110_v51 = vld [vmem:[%s4944_s9 + $0x90] sm:$0xff] }
 0x14c   :  { %v1783_v11 = vrot.slane %v1782_v53, 2  ;;  %v2783_v33 = vpack.c.bf16 %v2111_v19, %v2110_v51 }
 0x14e   :  { %v1784_v7 = vadd.f32 %v1783_v11, %v1782_v53  ;;  %2772 = vmatpush1.bf16.msra.mxu1 %v2771_v52  ;;  %v1990_v53 = vld [vmem:[%s4942_s7 + $0x98] sm:$0xff]  ;;  %v2737_v11 = vpack.c.bf16 %v1985_v29, %v1983_v58  ;;  %v2112_v52 = vld [vmem:[%s4944_s9 + $0xa0] sm:$0xff] }
 0x14f   :  { %2773 = vmatprep.subr.bf16.mxu1 %v5130_v15  ;;  %v2739_v12 = vpack.c.bf16 %v1990_v53, %v1988_v18 }
 0x150   :  { %v1785_v39 = vrot.slane %v1784_v7, 1 }
 0x152   :  { %v1786_v36 = vadd.f32 %v1785_v39, %v1784_v7  ;;  %v1987_v7 = vld [vmem:[%s4942_s7 + $0x80] sm:$0xff]  ;;  %v1992_v39 = vld [vmem:[%s4942_s7 + $0xa8] sm:$0xff]  ;;  %2775 = vmatpush1.bf16.msra.mxu1 %v2774_v41 }
 0x153   :  { %v2741_v13 = vpack.c.bf16 %v1989_v48, %v1987_v7  ;;  %2776 = vmatprep.subr.bf16.mxu1 %v5130_v15 }
 0x154   :  { %v1787_v9 = vmul.f32 0.00390625, %v1786_v36  ;;  %v2743_v36 = vpack.c.bf16 %v1994_v62, %v1992_v39 }
 0x156   :  { %v4691_v34 = vsel %vm1788_vm10, %v1283_v44, %v1787_v9  ;;  %v1991_v44 = vld [vmem:[%s4942_s7 + $0xa0] sm:$0xff]  ;;  %v1993_v9 = vld [vmem:[%s4942_s7 + $0xb0] sm:$0xff]  ;;  %2778 = vmatpush1.bf16.msra.mxu1 %v2777_v57 }
 0x157   :  { %2664 = vmatmul.mubr.f32.vlgmr.msra.gmra.mrb[26].mxu0 %v4691_v34  ;;  %1790 = vst [vmem:[#allocation4] sm:$0x3] %v4691_v34  ;;  %v2745_v63 = vpack.c.bf16 %v1993_v9, %v1991_v44  ;;  %2779 = vmatprep.subr.bf16.mxu1 %v5130_v15 }
 0x158   :  { %2719 = vmatpush3.bf16.msra.mxu0 %v2718_v43  ;;  %2674 = vmatprep.mubr.msk.f32.mxu0 %vm2949_vm7, %v5086_v10  ;;  %vm1896_vm7 = vcmask 261120   ;;  %v1996_v43 = vld [vmem:[%s4942_s7 + $0xc8] sm:$0xff] }
 0x159   :  { %2720 = vmatprep.subr.bf16.mxu0 %v5130_v15 }
 0x15c   :  { %2722 = vmatpush3.bf16.msra.mxu0 %v2721_v1  ;;  %v2747_v1 = vpack.c.bf16 %v1998_v2, %v1996_v43 }
 0x15d   :  { %2724 = vmatprep.subr.bf16.mxu0 %v2723_v59  ;;  %v2000_v59 = vld [vmem:[%s4942_s7 + $0xe8] sm:$0xff]  ;;  %s2212_s7 = sshll.u32 %s2951_s23, 4  ;;  %s2213_s7 = int_to_ptr.vmem [resolvable:$true] %s2212_s7 }
 0x15e   :  { %v2751_v47 = vpack.c.bf16 %v2002_v37, %v2000_v59 }
 0x22a   :  { %v1880_v0 = vpop.f32.mrb[26].mxu0 }
 0x22b   :  { %v1881_v30 = vadd.f32 %v2394_v38, %v1880_v0  ;;  %v2665_v21 = vpop.f32.mrb[27].mxu0  ;;  %v2113_v38 = vld [vmem:[%s4944_s9 + $0xa8] sm:$0xff]  ;;  %v2115_v0 = vld [vmem:[%s4944_s9 + $0xb8] sm:$0xff] }
 0x22c   :  { %v2786_v56 = vpack.c.bf16 %v2113_v38, %v2112_v52  ;;  %v2789_v54 = vpack.c.bf16 %v2115_v0, %v2114_v31 }
 0x22d   :  { %v1884_v42 = vmax.f32 %v1881_v30, 0.0 }
 0x22f   :  { %2675 = vmatmul.mubr.msk.f32.vlgmr.msra.gmra.mrb[28].mxu0 %vm1896_vm7, %v1884_v42  ;;  %v5131_v42 = vld [vmem:[#allocation9_spill] sm:$0xff] }
 0x230   :  { %2726 = vmatpush1.bf16.msra.mxu0 %v2725_v25  ;;  %2079 = vmatprep.mubr.f32.mxu0 %v5086_v10  ;;  %v2733_v10 = vpack.c.bf16 %v1981_v6, %v1979_v32  ;;  %v2011_v4 = vsub.s32 1, %v5131_v42 }
 0x231   :  { %2728 = vmatprep.subr.bf16.mxu0 %v2727_v26  ;;  %v2003_v26 = vld [vmem:[%s4943_s8] sm:$0x3]  ;;  %s2950_s8 = smov [#allocation4]  }
 0x232   :  { %v2012_v5 = vrot.slane %v2003_v26, %v2011_v4  ;;  %s2222_s22 = sshll.u32 %s2950_s8, 4  ;;  %s2223_s22 = int_to_ptr.vmem [resolvable:$true] %s2222_s22 }
 0x233   :  { %s2877_s24 = scalar_lea.vmem %s2223_s22, 32  ;;  %p2882_p1 = scmp.lt.s32.totalorder %s2223_s22, %s2223_s22 }
 0x234   :  { %2730 = vmatpush1.bf16.msra.mxu0 %v2729_v50  ;;  %p2878_p0 = scmp.ne.s32.totalorder %s2223_s22, %s2877_s24  ;;  %p2883_p2 = scmp.lt.s32.totalorder %s2877_s24, %s2877_s24 }
 0x235   :  { %2732 = vmatprep.subr.bf16.mxu0 %v2731_v40 }
 0x236   :  { %p2884_p3 = por %p2883_p2, %p2882_p1 }
 0x238   :  { %2734 = vmatpush1.bf16.msra.mxu0 %v2733_v10  ;;  %p2885_p4 = pnand %p2884_p3, %p2878_p0 }
 0x239   :  { %2736 = vmatprep.subr.bf16.mxu0 %v2735_v3  ;;  %v2397_v3 = vld [vmem:[%s4945_s10] ss:$0 sm:$0xff] }
 0x23c   :  { %2738 = vmatpush1.bf16.msra.mxu0 %v2737_v11 }
 0x23d   :  { %2740 = vmatprep.subr.bf16.mxu0 %v2739_v12 }
 0x240   :  { %2742 = vmatpush1.bf16.msra.mxu0 %v2741_v13 }
 0x241   :  { %2744 = vmatprep.subr.bf16.mxu0 %v2743_v36 }
 0x244   :  { %2746 = vmatpush1.bf16.msra.mxu0 %v2745_v63 }
 0x245   :  { %2748 = vmatprep.subr.bf16.mxu0 %v2747_v1 }
 0x248   :  { %2750 = vmatpush1.bf16.msra.mxu0 %v2749_v55 }
 0x249   :  { %2752 = vmatprep.subr.bf16.mxu0 %v2751_v47 }
 0x24c   :  { %2754 = vmatpush1.bf16.msra.mxu0 %v2753_v24 }
 0x24f   :  { %2080 = vmatmul.mubr.f32.vlgmr.msra.gmra.mrb[30].mxu0 %v4691_v34  ;;  %v2108_v34 = vld [vmem:[%s4944_s9 + $0x80] sm:$0xff] }
 0x250   :  { %v2780_v20 = vpack.c.bf16 %v2109_v27, %v2108_v34 }
 0x252   :  { %2781 = vmatpush1.bf16.msra.mxu1 %v2780_v20 }
 0x253   :  { %2782 = vmatprep.subr.bf16.mxu1 %v5130_v15 }
 0x256   :  { %2784 = vmatpush1.bf16.msra.mxu1 %v2783_v33 }
 0x257   :  { %2785 = vmatprep.subr.bf16.mxu1 %v5130_v15 }
 0x25a   :  { %2787 = vmatpush1.bf16.msra.mxu1 %v2786_v56 }
 0x25b   :  { %2788 = vmatprep.subr.bf16.mxu1 %v5130_v15  ;;  %v2007_v15 = vsub.s32 0, %v5131_v42 }
 0x25d   :  { %v2008_v14 = vrot.slane %v2003_v26, %v2007_v15 }
 0x25e   :  { %2790 = vmatpush1.bf16.msra.mxu1 %v2789_v54 }
 0x302   :  { %v1966_v30 = vpop.f32.mrb[28].mxu0 }
 0x303   :  { %v1967_v21 = vadd.f32 %v2395_v17, %v1966_v30  ;;  %v2676_v25 = vpop.f32.mrb[29].mxu0 }
 0x305   :  { %1970 = vst [vmem:[#allocation2] sm:$0x3] %v1967_v21 }
 0x322   :  { %v2081_v60 = vpop.f32.mrb[30].mxu0 }
 0x323   :  { %v2082_v50 = vadd.f32 %v2081_v60, %v2008_v14  ;;  %v2083_v40 = vpop.f32.mrb[31].mxu0 }
 0x324   :  { %v2084_v32 = vadd.f32 %v2083_v40, %v2012_v5 }
 0x325   :  { %v2088_v6 = vmul.f32 0.1, %v2082_v50  ;;  %vm2086_vm1 = vcmp.gt.f32.partialorder %v2082_v50, 0.0 }
 0x326   :  { %vm2087_vm2 = vcmp.gt.f32.partialorder %v2084_v32, 0.0  ;;  %v2089_v8 = vmul.f32 0.1, %v2084_v32 }
 0x327   :  { %v2090_v10 = vsel %vm2086_vm1, %v2082_v50, %v2088_v6 }
 0x328   :  { %v2091_v22 = vsel %vm2087_vm2, %v2084_v32, %v2089_v8 }
 0x329   :  { %2398 = vmatprep.mubr.msk.f32.mxu1 %vm2123_vm3, %v2091_v22 }
 0x32a   :  { %2192 = vmatmul.mubr.f32.vlgmr.msra.gmra.mrb[46].mxu1 %v2090_v10 }
 0x3fd   :  { %v2193_v58 = vpop.f32.mrb[46].mxu1 }
 0x3fe   :  { %v2194_v29 = vadd.f32 %v2397_v3, %v2193_v58  ;;  %v2195_v18 = vpop.f32.mrb[47].mxu1 }
 0x400   :  { %v2197_v53 = vmul.f32 %v2194_v29, %v2194_v29 }
 0x402   :  { %v2199_v11 = vsel %vm2198_vm12, %v2197_v53, 0.0 }
 0x403   :  { %2200 = vadd.xlane.f32.xlu0 %v2199_v11 }
 0x404   :  { %2888 = shalt.err (!%p2885_p4)
}
 0x405   :  { %s2889_s26 = scalar_lea.hbm %s4947_s12, 32 }
 0x406   :  { %p2890_p5 = scmp.ne.s32.totalorder %s4947_s12, %s2889_s26  ;;  %p2893_p6 = scmp.lt.u32.totalorder %s2889_s26, %s4947_s12 }
 0x408   :  { %p2895_p7 = pnand %p2893_p6, %p2890_p5 }
 0x40a   :  { %2898 = shalt.err (!%p2895_p7)
}
 0x40b   :  { %2225 = dma.vmem_to_hbm [thread:$0]  %s2223_s22, 32, %s4947_s12, [#allocation5]  }
 0x40c   :  { %s2899_s2 = scalar_lea.vmem %s2213_s7, 32  ;;  %p2904_p9 = scmp.lt.s32.totalorder %s2213_s7, %s2213_s7 }
 0x40d   :  { %p2900_p8 = scmp.ne.s32.totalorder %s2213_s7, %s2899_s2  ;;  %p2905_p10 = scmp.lt.s32.totalorder %s2899_s2, %s2899_s2 }
 0x40f   :  { %p2906_p11 = por %p2905_p10, %p2904_p9 }
 0x411   :  { %p2907_p12 = pnand %p2906_p11, %p2900_p8 }
 0x413   :  { %2910 = shalt.err (!%p2907_p12)
}
 0x414   :  { %s2911_s14 = scalar_lea.hbm %s4946_s11, 32 }
 0x415   :  { %p2912_p13 = scmp.ne.s32.totalorder %s4946_s11, %s2911_s14  ;;  %p2915_p0 = scmp.lt.u32.totalorder %s2911_s14, %s4946_s11 }
 0x417   :  { %p2917_p1 = pnand %p2915_p0, %p2912_p13 }
 0x419   :  { %2920 = shalt.err (!%p2917_p1)
}
 0x41a   :  { %2215 = dma.vmem_to_hbm [thread:$0]  %s2213_s7, 32, %s4946_s11, [#allocation3]  }
 0x41b   :  { %s2952_s19 = smov [#allocation6]  }
 0x41c   :  { %s2232_s20 = sshll.u32 %s2952_s19, 4  ;;  %s2233_s20 = int_to_ptr.vmem [resolvable:$true] %s2232_s20 }
 0x41d   :  { %s2921_s21 = scalar_lea.vmem %s2233_s20, 32  ;;  %p2926_p3 = scmp.lt.s32.totalorder %s2233_s20, %s2233_s20 }
 0x41e   :  { %p2922_p2 = scmp.ne.s32.totalorder %s2233_s20, %s2921_s21  ;;  %p2927_p4 = scmp.lt.s32.totalorder %s2921_s21, %s2921_s21 }
 0x420   :  { %p2928_p5 = por %p2927_p4, %p2926_p3 }
 0x422   :  { %p2929_p6 = pnand %p2928_p5, %p2922_p2 }
 0x490   :  { %v2201_v12 = vpop.xlane.xlu0 %2200 }
 0x491   :  { %v2202_v7 = vmax.f32 %v2201_v12, 1e-24 }
 0x493   :  { %2875 = vrsqrt.f32 %v2202_v7 }
 0x49d   :  { %v2876_v48 = vpop.eup %2875 }
 0x49e   :  { %v2204_v39 = vmul.f32 %v2876_v48, %v2194_v29 }
 0x4a0   :  { %2205 = vst [vmem:[#allocation6] sm:$0x3] %v2204_v39 }
 0x4a1   :  { %2932 = shalt.err (!%p2929_p6)
}
 0x4a2   :  { %s2933_s11 = scalar_lea.hbm %s4948_s13, 32 }
 0x4a3   :  { %p2934_p7 = scmp.ne.s32.totalorder %s4948_s13, %s2933_s11  ;;  %p2937_p8 = scmp.lt.u32.totalorder %s2933_s11, %s4948_s13 }
 0x4a5   :  { %p2939_p9 = pnand %p2937_p8, %p2934_p7 }
 0x4a7   :  { %2942 = shalt.err (!%p2939_p9)
}
 0x4a8   :  { %2235 = dma.vmem_to_hbm [thread:$0]  %s2233_s20, 32, %s4948_s13, [#allocation5]  }
 0x4a9   :  { %2943 = dma.done.wait [#allocation3], 32  }
 0x4aa   :  { %2944 = vsyncadd [#allocation3], 4294967264 }
 0x4ab   :  { %2945 = dma.done.wait [#allocation5], 64  }
 0x4ac   :  { %2946 = vsyncadd [#allocation5], 4294967232 }
 0x4ad   :  { %2245 = vsyncpa [#allocation3], 1 }
 0x4ae   :  { %2246 = vsyncpa [#allocation5], 1 }

</bundles_post_ra>
